<compile_context>
chip_gen: v6e
topology: v6e:2x2x1
jax: 0.10.0
libtpu: 0.0.40
codegen_flags: <defaults>
</compile_context>

<pallas_src>
import jax
import jax.numpy as jnp
import numpy as np
from jax.experimental import pallas as pl
from jax.experimental.pallas import tpu as pltpu


_LANE = 128
_SUBLANE_BF16 = 16            # bf16 packs 16 sublanes per vreg -> tm multiples of 16
_MIN_PALLAS_WORK = 1 << 17    # below this many padded MACs, plain XLA fusion wins
_VMEM_LIMIT = 48 * 1024 * 1024  # safe on v7x (64 MiB phys); > scoped default on v5e/v6e


def _round_up(x, m):
    return (x + m - 1) // m * m


def _pick_tile(dim, candidates, floor_align):
    """Pick the tile from `candidates` minimizing padded size (ties -> largest tile).
    If `dim` fits inside the smallest candidate, use the whole (aligned) dim as one tile.
    Re-applying this to an already-padded dim always returns a tile that divides it."""
    if dim <= candidates[-1]:
        return _round_up(dim, floor_align)
    best_t, best_pad = None, None
    for t in candidates:
        pad = _round_up(dim, t)
        if best_pad is None or pad < best_pad or (pad == best_pad and t > best_t):
            best_t, best_pad = t, pad
    return best_t


def _kn_plan(k, n):
    """Single source of truth for K/N padding + tile sizes (idempotent on padded dims)."""
    if k < _LANE:
        # SIREN first layer (in_size = 2-3): a full-extent K block (< 128) is legal, so
        # don't pad K to 128 -- avoids 40-60x wasted x reads / MXU work on that layer.
        tk = _round_up(k, _SUBLANE_BF16)
        k_pad = tk
    else:
        tk = _pick_tile(k, (512, 384, 256, 128), _LANE)
        k_pad = _round_up(k, tk)
    tn = _pick_tile(n, (512, 384, 256, 128), _LANE)
    n_pad = _round_up(n, tn)
    return k_pad, tk, n_pad, tn


def _m_plan(m, n_blocks):
    tm = _pick_tile(m, (1024, 896, 768, 640, 512, 384, 256, 128), _SUBLANE_BF16)
    m_pad = _round_up(m, tm)
    # v7x megacore: make sure at least one "parallel" axis has >=2 blocks so the second
    # TensorCore isn't idle (on v5e/v6e this just adds one cheap extra grid step).
    if (m_pad // tm == 1 and n_blocks == 1 and m_pad >= 256
            and (m_pad // 2) % _SUBLANE_BF16 == 0):
        tm = m_pad // 2
    return m_pad, tm


def sine_kernel(x_ref, wt_ref, b_ref, o_ref):
    """y = sin(x @ wt + b); siren_factor already folded into wt and b at prep time.
    Accumulates directly into the f32 output block (VMEM-resident across the k axis)."""
    k = pl.program_id(2)
    partial = jnp.dot(x_ref[...], wt_ref[...], preferred_element_type=jnp.float32)

    @pl.when(k == 0)
    def _():
        # Fold the bias into the first partial product: no zero-fill, no epilogue add.
        o_ref[...] = b_ref[...] + partial

    @pl.when(k > 0)
    def _():
        o_ref[...] += partial

    @pl.when(k == pl.num_programs(2) - 1)
    def _():
        o_ref[...] = jnp.sin(o_ref[...])


def prepare_sine_params(weight, bias, siren_factor=30.0):
    """One-time parameter prep (do NOT call per forward pass).

    weight: (out_size, in_size)  -- PyTorch nn.Linear layout
    bias:   (out_size,)
    Returns:
      wt: (k_pad, n_pad) bfloat16 = pad((siren_factor * weight).T)  -- kernel layout
      b : (1, n_pad)     float32  = pad(siren_factor * bias)
    siren_factor is folded once here (no per-tile scalar multiply in the kernel); bf16
    weights halve HBM traffic / double MXU rate while accumulation stays f32.
    """
    out_size, in_size = weight.shape
    k_pad, _, n_pad, _ = _kn_plan(in_size, out_size)

    wt = (siren_factor * weight).T.astype(jnp.float32)           # (in, out), one-time T
    wt = jnp.pad(wt, ((0, k_pad - in_size), (0, n_pad - out_size))).astype(jnp.bfloat16)
    b = (siren_factor * bias).reshape(1, out_size).astype(jnp.float32)
    b = jnp.pad(b, ((0, 0), (0, n_pad - out_size)))
    return wt, b


def sine_forward(x, wt, b, out_size):
    """x: (batch, in_size) f32; wt/b from prepare_sine_params. Returns (batch, out_size) f32."""
    batch, in_size = x.shape
    k_pad_w, n_pad_w = wt.shape
    # Re-derive tiles from the already-padded parameter shapes (idempotent with prepare).
    k_pad, tk, n_pad, tn = _kn_plan(k_pad_w, n_pad_w)
    assert k_pad == k_pad_w and n_pad == n_pad_w, "parameter padding / tile plan mismatch"

    # Tiny problems: fixed pallas_call + DMA overhead dominates -- let XLA fuse it.
    if batch * k_pad * n_pad < _MIN_PALLAS_WORK:
        y = jnp.dot(x.astype(jnp.bfloat16), wt[:in_size],
                    preferred_element_type=jnp.float32) + b
        return jnp.sin(y)[:, :out_size]

    m_pad, tm = _m_plan(batch, n_pad // tn)

    x_p = x
    if m_pad != batch or k_pad != in_size:
        x_p = jnp.pad(x, ((0, m_pad - batch), (0, k_pad - in_size)))
    x_p = x_p.astype(jnp.bfloat16)  # bf16 stream; f32 accumulation happens on the MXU

    grid = (m_pad // tm, n_pad // tn, k_pad // tk)

    cost = pl.CostEstimate(
        flops=2 * m_pad * k_pad * n_pad,
        transcendentals=m_pad * n_pad,
        bytes_accessed=2 * (m_pad * k_pad + k_pad * n_pad) + 4 * (n_pad + m_pad * n_pad),
    )

    out = pl.pallas_call(
        sine_kernel,
        out_shape=jax.ShapeDtypeStruct((m_pad, n_pad), jnp.float32),
        grid=grid,
        in_specs=[
            pl.BlockSpec((tm, tk), lambda i, j, k: (i, k)),
            pl.BlockSpec((tk, tn), lambda i, j, k: (k, j)),
            pl.BlockSpec((1, tn), lambda i, j, k: (0, j)),
        ],
        out_specs=pl.BlockSpec((tm, tn), lambda i, j, k: (i, j)),
        compiler_params=pltpu.CompilerParams(
            dimension_semantics=("parallel", "parallel", "arbitrary"),
            vmem_limit_bytes=_VMEM_LIMIT,
        ),
        cost_estimate=cost,
    )(x_p, wt, b)

    # Slice away padded rows / lanes.
    return out[:batch, :out_size]
    # TODO(synk): nn.Dropout (dropout > 0) would be a separate PRNG-masked op here;
    # the reference config uses dropout=0.0 (identity).


def init_sine_params(key, in_size, out_size):
    """Deterministic SIREN init (matches Sine.weight_init): weight ~ U(-sqrt(6/in)/30,
    sqrt(6/in)/30); bias keeps PyTorch nn.Linear default U(-1/sqrt(in), 1/sqrt(in))."""
    kw, kb = jax.random.split(key)
    w_bound = np.sqrt(6.0 / in_size) / 30.0
    weight = jax.random.uniform(
        kw, (out_size, in_size), jnp.float32, minval=-w_bound, maxval=w_bound
    )
    b_bound = 1.0 / np.sqrt(in_size)
    bias = jax.random.uniform(
        kb, (out_size,), jnp.float32, minval=-b_bound, maxval=b_bound
    )
    return weight, bias


if __name__ == "__main__":
    key = jax.random.PRNGKey(0)
    kx, kp = jax.random.split(key)

    # Big enough to take the Pallas path, still small overall.
    batch, in_size, out_size = 256, 64, 128
    siren_factor = 30.0

    x = jax.random.normal(kx, (batch, in_size), dtype=jnp.float32)
    weight, bias = init_sine_params(kp, in_size, out_size)

    # One-time parameter prep: fold siren_factor, transpose, pad, cast to bf16.
    wt, b = prepare_sine_params(weight, bias, siren_factor)

    out = jax.block_until_ready(sine_forward(x, wt, b, out_size))
    assert out.shape == (batch, out_size)

    # Reference 1: same bf16-rounded inputs, f32 accumulation (isolates kernel math).
    xb = x.astype(jnp.bfloat16).astype(jnp.float32)
    wb = (siren_factor * weight).astype(jnp.bfloat16).astype(jnp.float32)
    ref_bf16_in = jnp.sin(
        jnp.dot(xb, wb.T, precision=jax.lax.Precision.HIGHEST) + siren_factor * bias
    )
    np.testing.assert_allclose(np.asarray(out), np.asarray(ref_bf16_in),
                               rtol=1e-4, atol=1e-4)

    # Reference 2: full-f32 PyTorch semantics; loose tolerance accounts for bf16 inputs.
    ref_f32 = jnp.sin(
        siren_factor * (jnp.dot(x, weight.T, precision=jax.lax.Precision.HIGHEST) + bias)
    )
    np.testing.assert_allclose(np.asarray(out), np.asarray(ref_f32),
                               rtol=5e-2, atol=5e-2)

    print("KERNEL_OK")
</pallas_src>

<mosaic_0001>
module attributes {stable_mosaic.version = 11 : i64} {
  func.func @sine_kernel(%arg0: i32, %arg1: i32, %arg2: i32, %arg3: memref<128x64xbf16, #tpu.memory_space<vmem>>, %arg4: memref<64x128xbf16, #tpu.memory_space<vmem>>, %arg5: memref<1x128xf32, #tpu.memory_space<vmem>>, %arg6: memref<128x128xf32, #tpu.memory_space<vmem>>) attributes {dimension_semantics = [#tpu.dimension_semantics<parallel>, #tpu.dimension_semantics<parallel>, #tpu.dimension_semantics<arbitrary>], iteration_bounds = array<i64: 2, 1, 1>, scalar_prefetch = 0 : i64, scratch_operands = 0 : i64, tpu.core_type = #tpu.core_type<tc>, window_params = [{transform_indices = @transform_0, window_bounds = array<i64: 128, 64>}, {transform_indices = @transform_1, window_bounds = array<i64: 64, 128>}, {transform_indices = @transform_2, window_bounds = array<i64: 1, 128>}, {transform_indices = @transform_3, window_bounds = array<i64: 128, 128>}]} {
    %c0 = arith.constant 0 : index
    %c0_0 = arith.constant 0 : index
    %0 = vector.load %arg3[%c0, %c0_0] : memref<128x64xbf16, #tpu.memory_space<vmem>>, vector<128x64xbf16>
    %c0_1 = arith.constant 0 : index
    %c0_2 = arith.constant 0 : index
    %1 = vector.load %arg4[%c0_1, %c0_2] : memref<64x128xbf16, #tpu.memory_space<vmem>>, vector<64x128xbf16>
    %cst = arith.constant dense<0.000000e+00> : vector<128x128xf32>
    %2 = tpu.matmul %0, %1, %cst {dimension_numbers = #tpu.dot_dimension_numbers<[1], [0], [0], [1], [0, 0, 1, 1], [], []>} : vector<128x64xbf16>, vector<64x128xbf16>, vector<128x128xf32> -> vector<128x128xf32>
    %c0_i32 = arith.constant 0 : i32
    %3 = arith.cmpi eq, %arg2, %c0_i32 : i32
    %4 = arith.extui %3 : i1 to i32
    %c0_i32_3 = arith.constant 0 : i32
    %5 = arith.cmpi ne, %4, %c0_i32_3 : i32
    scf.if %5 {
      %c0_8 = arith.constant 0 : index
      %c0_9 = arith.constant 0 : index
      %12 = vector.load %arg5[%c0_8, %c0_9] : memref<1x128xf32, #tpu.memory_space<vmem>>, vector<1x128xf32>
      %13 = vector.broadcast %12 : vector<1x128xf32> to vector<128x128xf32>
      %14 = arith.addf %13, %2 : vector<128x128xf32>
      %c0_10 = arith.constant 0 : index
      %c0_11 = arith.constant 0 : index
      %15 = vector.load %arg6[%c0_10, %c0_11] : memref<128x128xf32, #tpu.memory_space<vmem>>, vector<128x128xf32>
      tpu.vector_store %arg6[%c0_10, %c0_11], %14 {strides = array<i32>} : memref<128x128xf32, #tpu.memory_space<vmem>>, vector<128x128xf32>,
    } else {
    }
    %c0_i32_4 = arith.constant 0 : i32
    %6 = arith.cmpi sgt, %arg2, %c0_i32_4 : i32
    %7 = arith.extui %6 : i1 to i32
    %c0_i32_5 = arith.constant 0 : i32
    %8 = arith.cmpi ne, %7, %c0_i32_5 : i32
    scf.if %8 {
      %c0_8 = arith.constant 0 : index
      %c0_9 = arith.constant 0 : index
      %12 = vector.load %arg6[%c0_8, %c0_9] : memref<128x128xf32, #tpu.memory_space<vmem>>, vector<128x128xf32>
      %13 = arith.addf %12, %2 : vector<128x128xf32>
      %c0_10 = arith.constant 0 : index
      %c0_11 = arith.constant 0 : index
      %14 = vector.load %arg6[%c0_10, %c0_11] : memref<128x128xf32, #tpu.memory_space<vmem>>, vector<128x128xf32>
      tpu.vector_store %arg6[%c0_10, %c0_11], %13 {strides = array<i32>} : memref<128x128xf32, #tpu.memory_space<vmem>>, vector<128x128xf32>,
    } else {
    }
    %c0_i32_6 = arith.constant 0 : i32
    %9 = arith.cmpi eq, %arg2, %c0_i32_6 : i32
    %10 = arith.extui %9 : i1 to i32
    %c0_i32_7 = arith.constant 0 : i32
    %11 = arith.cmpi ne, %10, %c0_i32_7 : i32
    scf.if %11 {
      %c0_8 = arith.constant 0 : index
      %c0_9 = arith.constant 0 : index
      %12 = vector.load %arg6[%c0_8, %c0_9] : memref<128x128xf32, #tpu.memory_space<vmem>>, vector<128x128xf32>
      %13 = math.sin %12 : vector<128x128xf32>
      %c0_10 = arith.constant 0 : index
      %c0_11 = arith.constant 0 : index
      %14 = vector.load %arg6[%c0_10, %c0_11] : memref<128x128xf32, #tpu.memory_space<vmem>>, vector<128x128xf32>
      tpu.vector_store %arg6[%c0_10, %c0_11], %13 {strides = array<i32>} : memref<128x128xf32, #tpu.memory_space<vmem>>, vector<128x128xf32>,
    } else {
    }
    return
  }
  func.func @transform_0(%arg0: i32, %arg1: i32, %arg2: i32) -> (i32, i32) {
    %c0_i32 = arith.constant 0 : i32
    return %arg0, %arg2 : i32, i32
  }
  func.func @transform_1(%arg0: i32, %arg1: i32, %arg2: i32) -> (i32, i32) {
    %c0_i32 = arith.constant 0 : i32
    return %arg2, %arg1 : i32, i32
  }
  func.func @transform_2(%arg0: i32, %arg1: i32, %arg2: i32) -> (i32, i32) {
    %c0_i32 = arith.constant 0 : i32
    %c0_i32_0 = arith.constant 0 : i32
    return %c0_i32, %arg1 : i32, i32
  }
  func.func @transform_3(%arg0: i32, %arg1: i32, %arg2: i32) -> (i32, i32) {
    %c0_i32 = arith.constant 0 : i32
    return %arg0, %arg1 : i32, i32
  }
}

</mosaic_0001>

<bundles_post_ra>
// kernel: tpu_custom_call.1
= control target key start
LH: loop header
LB: loop body
LE: loop exit
PB: predicated region body
PF: predicated region fallthrough
CT: control target
= control target key end

     0   :  { %8 = vsyncpa [#allocation3], 0  ;;  %s4115_s0 = inlined_call_operand.vmem [shape: bf16[256,64], index: 0, kind: input, shape index: {}]   ;;  %s4116_s1 = inlined_call_operand.vmem [shape: bf16[64,128], index: 1, kind: input, shape index: {}]   ;;  %s4117_s2 = inlined_call_operand.vmem [shape: f32[1,128], index: 2, kind: input, shape index: {}]   ;;  %s4118_s3 = inlined_call_operand.hbm [shape: f32[256,128], index: 3, kind: output, shape index: {}]  }
   0x1   :  { %10 = vsyncpa [#allocation3 + $0x1], 0  ;;  %s2836_s12 = smov 0   ;;  %s2838_s13 = smov 0  }
   0x2   :  { %s2840_s14 = smov 0   ;;  %s2842_s15 = smov 0  }
   0x3   :  { %s2844_s16 = smov 0   ;;  %s2846_s17 = smov 0  }
   0x4 LB: > { %s2379_s18 = sadd.s32 4294967295, %s2805_s17   ;;  %s2380_s19 = sadd.s32 4294967294, %s2805_s17   ;;  %s2805_s17 = sphi %s2846_s17, %s16_s17   ;;  %s2801_s16 = sphi %s2844_s16, %s4153_s16   ;;  %s2797_s15 = sphi %s2842_s15, %s4152_s15   ;;  %s2793_s14 = sphi %s2840_s14, %s4151_s14   ;;  %s2789_s13 = sphi %s2838_s13, %s4150_s13   ;;  %s2785_s12 = sphi %s2836_s12, %s4149_s12  }
   0x5   : > { %s35_s20 = sadd.s32 1, %s2801_s16  ;;  %s126_s21 = sadd.s32 1, %s2793_s14 }
   0x6   : > { %p37_p0 = scmp.ge.s32.totalorder %s35_s20, 2  ;;  %p136_p1 = scmp.ne.s32.totalorder %s2793_s14, %s2789_s13 }
   0x7   : > { %p137_p2 = scmp.eq.s32.totalorder %s2379_s18, 1  ;;  %p142_p3 = scmp.ne.s32.totalorder %s2789_s13, %s2785_s12 }
   0x8   : > { %s4155_s20 = smov (%p37_p0, %s35_s20), 0  ;;  %p143_p5 = scmp.eq.s32.totalorder %s2380_s19, 1 }
   0x9   : > { %p2876_p4 = por %p137_p2, %p136_p1  ;;  %s121_s23 = ssub.s32 %s2801_s16, %s4155_s20 }
   0xa   : > { %p2385_p6 = scmp.ge.s32.totalorder %s2805_s17, 1  ;;  %p124_p7 = scmp.eq.s32.totalorder %s121_s23, 0 }
   0xb   : > { %p2883_p8 = por %p143_p5, %p142_p3  ;;  %p191_p9 = scmp.lt.s32.totalorder %s2805_s17, 3 }
   0xc   : > { %s2889_s25 = scalar_select %p124_p7, %s2793_s14, %s126_s21  }
   0xd   : > { %p192_p10 = pnand %p2385_p6, %p191_p9 }
   0xe   : > { %s2387_s28 = sshll.u32 (!%p192_p10), %s2797_s15, 4  ;;  %s226_s21 = sand.u32 (!%p192_p10), 1, %s2789_s13  }
   0xf   : > { %195 = sbr.rel (%p192_p10) target bundleno = 680 (0x2a8), region = 32  ;;  %p230_p11 = scmp.lt.s32.totalorder (!%p192_p10), %s2387_s28, 31 }
  0x10   : > { %s2386_s23 = sshll.u32 (!%p192_p10), %s226_s21, 7  ;;  %s2479_s4 = sshll.u32 (!%p192_p10), %s2797_s15, 11 }
  0x11   : > { %s3224_s26 = scalar_lea.vmem (!%p192_p10), [#allocation2], %s2386_s23  ;;  %s4062_s8 = scalar_lea.hbm (!%p192_p10), %s4118_s3, %s2479_s4 }
  0x12   : > { %s2271_s5 = sshll.u32 (!%p192_p10), %s3224_s26, 4  ;;  %s4070_s15 = scalar_lea.sflag (!%p192_p10), [#allocation3], %s226_s21  ;;  %s4064_s5 = int_to_ptr.vmem [resolvable:$true] %s2271_s5 }
  0x13   : > { %s2729_s9 = scalar_lea.vmem (!%p192_p10), %s4064_s5, 2048  ;;  %s2813_s10 = smov (!%p192_p10), [#allocation2]  }
  0x14   : > { %v2651_v0 = vld [vmem:[%s4116_s1 + $0x18] sm:$0xff]   ;;  %v2652_v1 = vld [vmem:[%s4116_s1 + $0x10] sm:$0xff]   ;;  %s4157_s28 = smov (!%p230_p11, %s2387_s28), 31  ;;  %v2653_v2 = vld [vmem:[%s4116_s1 + $0x8] sm:$0xff]   ;;  %vm340_vm0 = vcmask 523264   ;;  %p2730_p12 = scmp.ne.s32.totalorder %s4064_s5, %s2729_s9 }
  0x15   : > { %2492 = vmatprep.subr.bf16.mxu0 %v2651_v0  ;;  %2516 = vmatprep.subr.bf16.mxu1 %v2651_v0  ;;  %s2388_s6 = sshll.u32 %s4157_s28, 2  ;;  %v2654_v3 = vld [vmem:[%s4116_s1] sm:$0xff]   ;;  %v2807_v48 = vmov 683565275   ;;  %v2808_v52 = vmov 2475754826  }
  0x16   : > { %2493 = vmatpush3.bf16.msra.mxu0 %v2651_v0  ;;  %2520 = vmatpush3.bf16.msra.mxu1 %v2651_v0  ;;  %s236_s11 = scalar_lea.vmem %s4115_s0, %s2388_s6  ;;  %v2918_v12 = vld [vmem:[%s4117_s2] ss:$0 sm:$0xff]  ;;  %v2809_v54 = vmov 2131351028   ;;  %v2810_v56 = vmov 2102212464   ;;  %p2731_p13 = pnand %p2730_p12, %p2876_p4 }
  0x17   : > { %2494 = vmatprep.subr.bf16.mxu0 %v2652_v1  ;;  %2517 = vmatprep.subr.bf16.mxu1 %v2652_v1  ;;  %v2655_v4 = vld [vmem:[%s236_s11] sm:$0xff]   ;;  %v2657_v6 = vld [vmem:[%s236_s11 + $0x8] sm:$0xff]   ;;  %v2659_v8 = vld [vmem:[%s236_s11 + $0x10] sm:$0xff]   ;;  %v2811_v58 = vmov 920167782  }
  0x18   : > { %v2656_v5 = vld [vmem:[%s236_s11 + $0x20] sm:$0xff]   ;;  %2500 = vmatprep.mubr.msk.bf16.mxu0 %vm340_vm0, %v2655_v4  ;;  %v2658_v7 = vld [vmem:[%s236_s11 + $0x28] sm:$0xff]   ;;  %v2660_v9 = vld [vmem:[%s236_s11 + $0x30] sm:$0xff]   ;;  %p2732_p0 = pneg %p2731_p13 }
  0x19   : > { %2508 = vmatprep.mubr.msk.bf16.mxu1 %vm340_vm0, %v2656_v5  ;;  %v2661_v10 = vld [vmem:[%s236_s11 + $0x18] sm:$0xff]  }
  0x1a   : > { %2495 = vmatpush3.bf16.msra.mxu0 %v2652_v1  ;;  %2521 = vmatpush3.bf16.msra.mxu1 %v2652_v1  ;;  %v2662_v11 = vld [vmem:[%s236_s11 + $0x38] sm:$0xff]   ;;  %v2812_v1 = vmov 1326507024   ;;  %s2733_s11 = sshll.u32 %s2813_s10, 4  ;;  %s2734_s11 = int_to_ptr.vmem [resolvable:$false] %s2733_s11 }
  0x1b   : > { %2496 = vmatprep.subr.bf16.mxu0 %v2653_v2  ;;  %2518 = vmatprep.subr.bf16.mxu1 %v2653_v2  ;;  %s2735_s18 = scalar_lea.vmem %s2734_s11, 4096  ;;  %p2736_p1 = scmp.lt.s32.totalorder %s4064_s5, %s2734_s11 }
  0x1c   : > { %p2737_p2 = scmp.lt.s32.totalorder %s2735_s18, %s2729_s9 }
  0x1e   : > { %2497 = vmatpush3.bf16.msra.mxu0 %v2653_v2  ;;  %2522 = vmatpush3.bf16.msra.mxu1 %v2653_v2  ;;  %p2738_p3 = por %p2737_p2, %p2736_p1 }
  0x1f   : > { %2498 = vmatprep.subr.bf16.mxu0 %v2654_v3  ;;  %2519 = vmatprep.subr.bf16.mxu1 %v2654_v3 }
  0x20   : > { %p2739_p5 = pnand %p2738_p3, %p2732_p0 }
  0x22   : > { %2499 = vmatpush3.bf16.msra.mxu0 %v2654_v3  ;;  %2523 = vmatpush3.bf16.msra.mxu1 %v2654_v3 }
  0x25   : > { %2501 = vmatmul.mubr.msk.bf16.vlgmr.msra.gmra.mxu0 %vm340_vm0, %v2657_v6  ;;  %2509 = vmatmul.mubr.msk.bf16.vlgmr.msra.gmra.mxu1 %vm340_vm0, %v2658_v7 }
  0x26   : > { %2504 = vmatprep.mubr.msk.bf16.mxu0 %vm340_vm0, %v2659_v8  ;;  %2512 = vmatprep.mubr.msk.bf16.mxu1 %vm340_vm0, %v2660_v9 }
  0x2d   : > { %2505 = vmatmul.mubr.msk.bf16.gmra.mxu0 %vm340_vm0, %v2661_v10  ;;  %2513 = vmatmul.mubr.msk.bf16.gmra.mxu1 %vm340_vm0, %v2662_v11 }
  0xe5   : > { %v2502_v13 = vpop.f32.mrf.mxu0  ;;  %v2510_v14 = vpop.f32.mrf.mxu1 }
  0xe6   : > { %v2921_v15 = vadd.f32 %v2502_v13, %v2918_v12  ;;  %v2924_v16 = vadd.f32 %v2510_v14, %v2918_v12 }
  0xe7   : > { %v399_v17 = vpop.f32.mrf.mxu0  ;;  %v431_v36 = vpop.f32.mrf.mxu1 }
  0xe8   : > { %v784_v18 = vand.u32 2147483647, %v2921_v15  ;;  %v787_v19 = vand.u32 2139095040, %v2921_v15  ;;  %v1616_v20 = vand.u32 2147483647, %v2924_v16  ;;  %v1619_v21 = vand.u32 2139095040, %v2924_v16 }
  0xe9   : > { %v2933_v24 = vadd.f32 %v2918_v12, %v399_v17  ;;  %v2940_v42 = vadd.f32 %v2918_v12, %v431_v36  ;;  %vm786_vm14 = vcmp.lt.s32.totalorder %v2921_v15, 0 }
  0xea   : > { %v788_v22 = vshrl.u32 %v787_v19, 23  ;;  %v791_v23 = vand.u32 8388607, %v784_v18  ;;  %v1620_v25 = vshrl.u32 %v1619_v21, 23  ;;  %v1623_v26 = vand.u32 8388607, %v1616_v20 }
  0xeb   : > { %v579_v29 = vand.u32 2139095040, %v2933_v24  ;;  %v576_v34 = vand.u32 2147483647, %v2933_v24  ;;  %vm3045_vm15 = vcmp.le.f32.partialorder %v784_v18, 0.7853982 }
  0xec   : > { %v2418_v27 = vadd.s32 4294967169, %v788_v22  ;;  %v2450_v28 = vadd.s32 4294967169, %v1620_v25  ;;  %v792_v30 = vor.u32 8388608, %v791_v23  ;;  %v1624_v32 = vor.u32 8388608, %v1623_v26 }
  0xed   : > { %v580_v35 = vshrl.u32 %v579_v29, 23  ;;  %v2950_v46 = vand.u32 8388607, %v576_v34 }
  0xee   : > { %v794_v31 = vadd.s32 1, %v2418_v27  ;;  %v1626_v33 = vadd.s32 1, %v2450_v28  ;;  %v2942_v43 = vshll.u32 %v792_v30, 8  ;;  %v2946_v45 = vshll.u32 %v1624_v32, 8 }
  0xef   : > { %v2410_v38 = vadd.s32 4294967169, %v580_v35 }
  0xf0   : > { %vm795_vm1 = vcmp.gt.s32.totalorder %v794_v31, 0  ;;  %vm1627_vm2 = vcmp.gt.s32.totalorder %v1626_v33, 0 }
  0xf1   : > { %v796_v37 = vsel %vm795_vm1, %v794_v31, 0  ;;  %v1628_v41 = vsel %vm1627_vm2, %v1626_v33, 0  ;;  %v2953_v51 = vadd.s32 1, %v2410_v38 }
  0xf2   : > { %v797_v39 = vshrl.u32 %v796_v37, 5  ;;  %v798_v40 = vand.u32 31, %v796_v37  ;;  %v2944_v44 = vshrl.u32 %v1628_v41, 5  ;;  %v1630_v50 = vand.u32 31, %v1628_v41 }
  0xf3   : > { %vm587_vm12 = vcmp.gt.s32.totalorder %v2953_v51, 0 }
  0xf4   : > { %v799_v47 = vsub.s32 32, %v798_v40  ;;  %v801_v49 = vshll.u32 %v2807_v48, %v798_v40  ;;  %v804_v53 = vshll.u32 %v2808_v52, %v798_v40  ;;  %v807_v55 = vshll.u32 %v2809_v54, %v798_v40 }
  0xf5   : > { %v810_v57 = vshll.u32 %v2810_v56, %v798_v40  ;;  %v813_v59 = vshll.u32 %v2811_v58, %v798_v40  ;;  %vm816_vm3 = vcmp.lt.s32.totalorder %v797_v39, 1  ;;  %vm817_vm4 = vcmp.lt.s32.totalorder %v797_v39, 2 }
  0xf6   : > { %v802_v60 = vshrl.u32 %v2808_v52, %v799_v47  ;;  %v805_v61 = vshrl.u32 %v2809_v54, %v799_v47  ;;  %v808_v62 = vshrl.u32 %v2810_v56, %v799_v47  ;;  %v800_v63 = vshrl.u32 %v2807_v48, %v799_v47 }
  0xf7   : > { %v811_v0 = vshrl.u32 %v2811_v58, %v799_v47  ;;  %v814_v2 = vshrl.u32 %v2812_v1, %v799_v47  ;;  %v1631_v6 = vsub.s32 32, %v1630_v50  ;;  %vm818_vm5 = vcmp.lt.s32.totalorder %v797_v39, 3 }
  0xf8   : > { %v803_v3 = vor.u32 %v802_v60, %v801_v49  ;;  %v806_v4 = vor.u32 %v805_v61, %v804_v53  ;;  %v809_v5 = vor.u32 %v808_v62, %v807_v55  ;;  %vm819_vm6 = vcmp.lt.s32.totalorder %v797_v39, 4 }
  0xf9   : > { %v812_v7 = vor.u32 %v811_v0, %v810_v57  ;;  %v815_v8 = vor.u32 %v814_v2, %v813_v59  ;;  %v1633_v21 = vshll.u32 %v2807_v48, %v1630_v50  ;;  %v1634_v25 = vshrl.u32 %v2808_v52, %v1631_v6 }
  0xfa   : > { %v820_v9 = vsel %vm816_vm3, %v800_v63, %v803_v3  ;;  %v821_v10 = vsel %vm819_vm6, %v809_v5, 2102212464  ;;  %v824_v11 = vsel %vm816_vm3, %v803_v3, %v806_v4  ;;  %v828_v13 = vsel %vm816_vm3, %v806_v4, %v809_v5 }
  0xfb   : > { %v822_v14 = vsel %vm818_vm5, %v806_v4, %v821_v10  ;;  %v825_v17 = vsel %vm819_vm6, %v812_v7, 920167782  ;;  %v829_v19 = vsel %vm819_vm6, %v815_v8, 1326507024  ;;  %v1636_v26 = vshll.u32 %v2808_v52, %v1630_v50 }
  0xfc   : > { %v826_v22 = vsel %vm818_vm5, %v809_v5, %v825_v17  ;;  %v830_v23 = vsel %vm818_vm5, %v812_v7, %v829_v19  ;;  %v823_v27 = vsel %vm817_vm4, %v820_v9, %v822_v14  ;;  %v1637_v30 = vshrl.u32 %v2809_v54, %v1631_v6 }
  0xfd   : > { %v827_v28 = vsel %vm817_vm4, %v824_v11, %v826_v22  ;;  %v831_v29 = vsel %vm817_vm4, %v828_v13, %v830_v23  ;;  %v1635_v36 = vor.u32 %v1634_v25, %v1633_v21  ;;  %v1639_v38 = vshll.u32 %v2809_v54, %v1630_v50 }
  0xfe   : > { %v2976_v31 = vmul.u32.u64.low %v2942_v43, %v831_v29  ;;  %v2977_v32 = vmul.u32.u64.high %v2942_v43, %v831_v29, %v2976_v31  ;;  %v2980_v33 = vmul.u32.u64.low %v2942_v43, %v827_v28  ;;  %v2981_v35 = vmul.u32.u64.high %v2942_v43, %v827_v28, %v2980_v33 }
  0xff   : > { %v1638_v37 = vor.u32 %v1637_v30, %v1636_v26  ;;  %v1640_v40 = vshrl.u32 %v2810_v56, %v1631_v6  ;;  %v1632_v41 = vshrl.u32 %v2807_v48, %v1631_v6  ;;  %v1642_v39 = vshll.u32 %v2810_v56, %v1630_v50 }
 0x100   : > { %v1643_v47 = vshrl.u32 %v2811_v58, %v1631_v6  ;;  %v1646_v49 = vshrl.u32 %v2812_v1, %v1631_v6  ;;  %v839_v53 = vmul.u32 %v2942_v43, %v823_v27  ;;  %v1645_v57 = vshll.u32 %v2811_v58, %v1630_v50 }
 0x101   : > { %v1641_v55 = vor.u32 %v1640_v40, %v1639_v38  ;;  %vm1648_vm7 = vcmp.lt.s32.totalorder %v2944_v44, 1  ;;  %vm841_vm8 = vc.u32 %v2977_v32, %v2980_v33  ;;  %v842_v59 = vadd.s32 1, %v2981_v35 }
 0x102   : > { %v1644_v60 = vor.u32 %v1643_v47, %v1642_v39  ;;  %vm1649_vm9 = vcmp.lt.s32.totalorder %v2944_v44, 2  ;;  %v1647_v61 = vor.u32 %v1646_v49, %v1645_v57  ;;  %vm1650_vm10 = vcmp.lt.s32.totalorder %v2944_v44, 3 }
 0x103   : > { %vm1651_vm11 = vcmp.lt.s32.totalorder %v2944_v44, 4  ;;  %v1656_v62 = vsel %vm1648_vm7, %v1635_v36, %v1638_v37  ;;  %v843_v43 = vsel %vm841_vm8, %v842_v59, %v2981_v35  ;;  %v1660_v50 = vsel %vm1648_vm7, %v1638_v37, %v1641_v55 }
 0x104   : > { %v1653_v63 = vsel %vm1651_vm11, %v1641_v55, 2102212464  ;;  %v1657_v0 = vsel %vm1651_vm11, %v1644_v60, 920167782  ;;  %v844_v2 = vadd.s32 %v843_v43, %v839_v53  ;;  %v1652_v3 = vsel %vm1648_vm7, %v1632_v41, %v1635_v36 }
 0x105   : > { %v1658_v4 = vsel %vm1650_vm10, %v1641_v55, %v1657_v0  ;;  %v1661_v5 = vsel %vm1651_vm11, %v1647_v61, 1326507024  ;;  %v1654_v6 = vsel %vm1650_vm10, %v1638_v37, %v1653_v63  ;;  %v588_v19 = vsel %vm587_vm12, %v2953_v51, 0 }
 0x106   : > { %v1659_v7 = vsel %vm1649_vm9, %v1656_v62, %v1658_v4  ;;  %v1662_v8 = vsel %vm1650_vm10, %v1644_v60, %v1661_v5  ;;  %v845_v9 = vadd.s32 536870912, %v844_v2  ;;  %v1655_v22 = vsel %vm1649_vm9, %v1652_v3, %v1654_v6 }
 0x107   : > { %v1663_v10 = vsel %vm1649_vm9, %v1660_v50, %v1662_v8  ;;  %v3004_v11 = vmul.u32.u64.low %v2946_v45, %v1659_v7  ;;  %v3005_v13 = vmul.u32.u64.high %v2946_v45, %v1659_v7, %v3004_v11  ;;  %v590_v23 = vand.u32 31, %v588_v19 }
 0x108   : > { %v3009_v14 = vmul.u32.u64.low %v2946_v45, %v1663_v10  ;;  %v3010_v17 = vmul.u32.u64.high %v2946_v45, %v1663_v10, %v3009_v14  ;;  %v846_v21 = vshrl.u32 %v845_v9, 30  ;;  %v1411_v25 = vand.u32 2139095040, %v2940_v42 }
 0x109   : > { %v1674_v27 = vadd.s32 1, %v3005_v13  ;;  %v584_v28 = vor.u32 8388608, %v2950_v46  ;;  %v1671_v29 = vmul.u32 %v2946_v45, %v1655_v22  ;;  %v591_v30 = vsub.s32 32, %v590_v23 }
 0x10a   : > { %v847_v26 = vshll.u32 %v846_v21, 30  ;;  %vm1673_vm13 = vc.u32 %v3010_v17, %v3004_v11  ;;  %v1412_v44 = vshrl.u32 %v1411_v25, 23  ;;  %v840_v36 = vadd.s32 %v2980_v33, %v2977_v32 }
 0x10b   : > { %v1675_v51 = vsel %vm1673_vm13, %v1674_v27, %v3005_v13  ;;  %v3027_v38 = vshll.u32 %v584_v28, 8  ;;  %v1408_v45 = vand.u32 2147483647, %v2940_v42  ;;  %v3030_v40 = vshrl.u32 %v588_v19, 5 }
 0x10c   : > { %v3021_v31 = vsub.s32 %v844_v2, %v847_v26  ;;  %v1676_v35 = vadd.s32 %v1675_v51, %v1671_v29  ;;  %v594_v41 = vshrl.u32 %v2808_v52, %v591_v30  ;;  %v597_v39 = vshrl.u32 %v2809_v54, %v591_v30 }
 0x10d   : > { %v600_v49 = vshrl.u32 %v2810_v56, %v591_v30  ;;  %v603_v53 = vshrl.u32 %v2811_v58, %v591_v30  ;;  %v3037_v32 = vadd.s32 4294967169, %v1412_v44  ;;  %v870_v33 = vsub.s32 4, %v846_v21 }
 0x10e   : > { %v850_v37 = vsub.s32 0, %v3021_v31  ;;  %v1677_v46 = vadd.s32 536870912, %v1676_v35  ;;  %v593_v57 = vshll.u32 %v2807_v48, %v590_v23  ;;  %v596_v59 = vshll.u32 %v2808_v52, %v590_v23 }
 0x10f   : > { %v599_v62 = vshll.u32 %v2809_v54, %v590_v23  ;;  %v602_v43 = vshll.u32 %v2810_v56, %v590_v23  ;;  %v606_v63 = vshrl.u32 %v2812_v1, %v591_v30  ;;  %v3055_v3 = vand.u32 8388607, %v1408_v45 }
 0x110   : > { %v2419_v47 = vmin.u32 %v850_v37, %v3021_v31  ;;  %v3039_v55 = vshrl.u32 %v1677_v46, 30  ;;  %v595_v50 = vor.u32 %v594_v41, %v593_v57  ;;  %v598_v2 = vor.u32 %v597_v39, %v596_v59 }
 0x111   : > { %v601_v18 = vor.u32 %v600_v49, %v599_v62  ;;  %v604_v5 = vor.u32 %v603_v53, %v602_v43  ;;  %v605_v6 = vshll.u32 %v2811_v58, %v590_v23  ;;  %v871_v7 = vsel %vm786_vm14, %v870_v33, %v846_v21 }
 0x112   : > { %v852_v61 = vclz %v2419_v47  ;;  %v1679_v0 = vshll.u32 %v3039_v55, 30  ;;  %v592_v9 = vshrl.u32 %v2807_v48, %v591_v30  ;;  %vm608_vm0 = vcmp.lt.s32.totalorder %v3030_v40, 1 }
 0x113   : > { %v607_v10 = vor.u32 %v606_v63, %v605_v6  ;;  %vm609_vm2 = vcmp.lt.s32.totalorder %v3030_v40, 2  ;;  %vm610_vm3 = vcmp.lt.s32.totalorder %v3030_v40, 3  ;;  %vm1618_vm4 = vcmp.lt.s32.totalorder %v2924_v16, 0 }
 0x114   : > { %v2420_v4 = vadd.s32 4294967294, %v852_v61  ;;  %v3060_v8 = vsub.s32 %v1676_v35, %v1679_v0  ;;  %vm611_vm5 = vcmp.lt.s32.totalorder %v3030_v40, 4  ;;  %v616_v19 = vsel %vm608_vm0, %v595_v50, %v598_v2 }
 0x115   : > { %v613_v23 = vsel %vm611_vm5, %v601_v18, 2102212464  ;;  %v617_v25 = vsel %vm611_vm5, %v604_v5, 920167782  ;;  %v620_v29 = vsel %vm608_vm0, %v598_v2, %v601_v18  ;;  %v621_v35 = vsel %vm611_vm5, %v607_v10, 1326507024 }
 0x116   : > { %vm2421_vm1 = vcmp.lt.s32.totalorder %v2420_v4, 0  ;;  %v1682_v14 = vsub.s32 0, %v3060_v8  ;;  %v618_v28 = vsel %vm610_vm3, %v601_v18, %v617_v25  ;;  %v873_v37 = vsel %vm3045_vm15, 0, %v871_v7 }
 0x117   : > { %v855_v13 = vsel %vm2421_vm1, 0, %v2420_v4  ;;  %v619_v44 = vsel %vm609_vm2, %v616_v19, %v618_v28  ;;  %vm3083_vm6 = vcmp.le.f32.partialorder %v1616_v20, 0.7853982  ;;  %v612_v41 = vsel %vm608_vm0, %v592_v9, %v595_v50 }
 0x118   : > { %v856_v21 = vsub.s32 32, %v855_v13  ;;  %v860_v22 = vsub.s32 4294967266, %v855_v13  ;;  %v857_v26 = vshll.u32 %v3021_v31, %v855_v13  ;;  %v2451_v27 = vmin.u32 %v1682_v14, %v3060_v8 }
 0x119   : > { %v1702_v49 = vsub.s32 4, %v3039_v55  ;;  %v622_v53 = vsel %vm610_vm3, %v604_v5, %v621_v35  ;;  %v3097_v57 = vmul.u32.u64.low %v3027_v38, %v619_v44  ;;  %v3098_v59 = vmul.u32.u64.high %v3027_v38, %v619_v44, %v3097_v57 }
 0x11a   : > { %v858_v30 = vshrl.u32 %v840_v36, %v856_v21  ;;  %v861_v51 = vadd.s32 127, %v860_v22  ;;  %v1684_v46 = vclz %v2451_v27  ;;  %v614_v36 = vsel %vm610_vm3, %v598_v2, %v613_v23  ;;  %v2503_v21 = vpop.f32.mrf.mxu0 }
 0x11b   : > { %v623_v20 = vsel %vm609_vm2, %v620_v29, %v622_v53  ;;  %v615_v62 = vsel %vm609_vm2, %v612_v41, %v614_v36  ;;  %v877_v0 = vadd.s32 3, %v873_v37  ;;  %v1672_v50 = vadd.s32 %v3004_v11, %v3010_v17 }
 0x11c   : > { %v859_v39 = vor.u32 %v858_v30, %v857_v26  ;;  %v862_v47 = vshll.u32 %v861_v51, 23  ;;  %v2452_v33 = vadd.s32 4294967294, %v1684_v46  ;;  %v1418_v2 = vadd.s32 1, %v3037_v32 }
 0x11d   : > { %v3104_v43 = vmul.u32.u64.low %v3027_v38, %v623_v20  ;;  %v3105_v63 = vmul.u32.u64.high %v3027_v38, %v623_v20, %v3104_v43  ;;  %v1703_v6 = vsel %vm1618_vm4, %v1702_v49, %v3039_v55  ;;  %v631_v9 = vmul.u32 %v3027_v38, %v615_v62 }
 0x11e   : > { %v863_v61 = vor.u32 4788187, %v862_v47  ;;  %vm2453_vm7 = vcmp.lt.s32.totalorder %v2452_v33, 0  ;;  %v866_v18 = vcvt.s32.f32 %v859_v39  ;;  %v634_v10 = vadd.s32 1, %v3098_v59 }
 0x11f   : > { %v1687_v5 = vsel %vm2453_vm7, 0, %v2452_v33  ;;  %vm633_vm8 = vc.u32 %v3105_v63, %v3097_v57  ;;  %vm1419_vm9 = vcmp.gt.s32.totalorder %v1418_v2, 0  ;;  %v1705_v22 = vsel %vm3083_vm6, 0, %v1703_v6 }
 0x120   : > { %v864_v4 = vand.u32 2147483647, %v863_v61  ;;  %v1688_v40 = vsub.s32 32, %v1687_v5  ;;  %v1692_v7 = vsub.s32 4294967266, %v1687_v5  ;;  %v1689_v14 = vshll.u32 %v3060_v8, %v1687_v5 }
 0x121   : > { %v635_v32 = vsel %vm633_vm8, %v634_v10, %v3098_v59  ;;  %v1420_v19 = vsel %vm1419_vm9, %v1418_v2, 0  ;;  %v3124_v29 = vadd.f32 %v2503_v21, %v2918_v12  ;;  %v3129_v51 = vand.u32 3, %v877_v0 }
 0x122   : > { %v867_v13 = vmul.f32 %v866_v18, %v864_v4  ;;  %v1690_v11 = vshrl.u32 %v1672_v50, %v1688_v40  ;;  %v1693_v17 = vadd.s32 127, %v1692_v7  ;;  %v636_v38 = vadd.s32 %v635_v32, %v631_v9 }
 0x123   : > { %v1422_v23 = vand.u32 31, %v1420_v19  ;;  %v3131_v35 = vadd.s32 3, %v1705_v22  ;;  %v1416_v46 = vor.u32 8388608, %v3055_v3  ;;  %vm578_vm10 = vcmp.lt.s32.totalorder %v2933_v24, 0 }
 0x124   : > { %v868_v55 = vxor.u32 2147483648, %v867_v13  ;;  %v1691_v25 = vor.u32 %v1690_v11, %v1689_v14  ;;  %v1694_v26 = vshll.u32 %v1693_v17, 23  ;;  %v637_v27 = vadd.s32 536870912, %v636_v38 }
 0x125   : > { %v1423_v28 = vsub.s32 32, %v1422_v23  ;;  %v3137_v49 = vshrl.u32 %v1420_v19, 5  ;;  %v1425_v53 = vshll.u32 %v2807_v48, %v1422_v23  ;;  %v1428_v59 = vshll.u32 %v2808_v52, %v1422_v23 }
 0x126   : > { %v869_v8 = vsel %vm786_vm14, %v868_v55, %v867_v13  ;;  %v1695_v44 = vor.u32 4788187, %v1694_v26  ;;  %v638_v37 = vshrl.u32 %v637_v27, 30  ;;  %v1698_v39 = vcvt.s32.f32 %v1691_v25 }
 0x127   : > { %v872_v30 = vsel %vm3045_vm15, %v2921_v15, %v869_v8  ;;  %v1426_v41 = vshrl.u32 %v2808_v52, %v1423_v28  ;;  %v1429_v47 = vshrl.u32 %v2809_v54, %v1423_v28  ;;  %v1432_v33 = vshrl.u32 %v2810_v56, %v1423_v28 }
 0x128   : > { %2663 = vcosq.f32 %v872_v30  ;;  %v1696_v36 = vand.u32 2147483647, %v1695_v44  ;;  %v639_v60 = vshll.u32 %v638_v37, 30  ;;  %v1434_v3 = vshll.u32 %v2810_v56, %v1422_v23 }
 0x129   : > { %2665 = vsinq.f32 %v872_v30  ;;  %v1435_v61 = vshrl.u32 %v2811_v58, %v1423_v28  ;;  %v1427_v43 = vor.u32 %v1426_v41, %v1425_v53  ;;  %v1431_v0 = vshll.u32 %v2809_v54, %v1422_v23 }
 0x12a   : > { %v1699_v20 = vmul.f32 %v1698_v39, %v1696_v36  ;;  %v3144_v62 = vsub.s32 %v636_v38, %v639_v60  ;;  %v891_v50 = vand.u32 2139095040, %v3124_v29  ;;  %v1430_v4 = vor.u32 %v1429_v47, %v1428_v59 }
 0x12b   : > { %v1436_v18 = vor.u32 %v1435_v61, %v1434_v3  ;;  %v1438_v5 = vshrl.u32 %v2812_v1, %v1423_v28  ;;  %v632_v6 = vadd.s32 %v3097_v57, %v3105_v63  ;;  %v1433_v7 = vor.u32 %v1432_v33, %v1431_v0 }
 0x12c   : > { %v1700_v2 = vxor.u32 2147483648, %v1699_v20  ;;  %v642_v40 = vsub.s32 0, %v3144_v62  ;;  %v1437_v9 = vshll.u32 %v2811_v58, %v1422_v23  ;;  %vm883_vm11 = vcmp.eq.s32.totalorder %v3129_v51, 2 }
 0x12d   : > { %v662_v13 = vsub.s32 4, %v638_v37  ;;  %vm1440_vm12 = vcmp.lt.s32.totalorder %v3137_v49, 1  ;;  %v3157_v14 = vshll.u32 %v1416_v46, 8  ;;  %vm880_vm13 = vcmp.eq.s32.totalorder %v3129_v51, 0 }
 0x12e   : > { %v1701_v10 = vsel %vm1618_vm4, %v1700_v2, %v1699_v20  ;;  %v2411_v63 = vmin.u32 %v642_v40, %v3144_v62  ;;  %v1439_v11 = vor.u32 %v1438_v5, %v1437_v9  ;;  %vm1443_vm14 = vcmp.lt.s32.totalorder %v3137_v49, 4 }
 0x12f   : > { %v1704_v57 = vsel %vm3083_vm6, %v2924_v16, %v1701_v10  ;;  %vm879_vm15 = vcmp.lt.s32.totalorder %v3129_v51, 2  ;;  %v1424_v17 = vshrl.u32 %v2807_v48, %v1423_v28  ;;  %v1448_v32 = vsel %vm1440_vm12, %v1427_v43, %v1430_v4 }
 0x130   : > { %2667 = vcosq.f32 %v1704_v57  ;;  %v1449_v19 = vsel %vm1443_vm14, %v1436_v18, 920167782  ;;  %vm876_vm0 = vweird.f32 %v2921_v15  ;;  %vm3174_vm1 = vcmp.le.f32.partialorder %v576_v34, 0.7853982 }
 0x131   : > { %2669 = vsinq.f32 %v1704_v57  ;;  %v644_v21 = vclz %v2411_v63  ;;  %vm1442_vm2 = vcmp.lt.s32.totalorder %v3137_v49, 3  ;;  %v1445_v55 = vsel %vm1443_vm14, %v1433_v7, 2102212464 }
 0x132   : > { %v663_v22 = vsel %vm578_vm10, %v662_v13, %v638_v37  ;;  %vm1441_vm3 = vcmp.lt.s32.totalorder %v3137_v49, 2  ;;  %v1450_v38 = vsel %vm1442_vm2, %v1433_v7, %v1449_v19  ;;  %v1452_v34 = vsel %vm1440_vm12, %v1430_v4, %v1433_v7 }
 0x133   : > { %v2412_v23 = vadd.s32 4294967294, %v644_v21  ;;  %v1444_v25 = vsel %vm1440_vm12, %v1424_v17, %v1427_v43  ;;  %v1451_v26 = vsel %vm1441_vm3, %v1448_v32, %v1450_v38  ;;  %v1453_v8 = vsel %vm1443_vm14, %v1439_v11, 1326507024 }
 0x134   : > { %v1446_v28 = vsel %vm1442_vm2, %v1430_v4, %v1445_v55  ;;  %v1454_v30 = vsel %vm1442_vm2, %v1436_v18, %v1453_v8  ;;  %v3194_v44 = vmul.u32.u64.low %v3157_v14, %v1451_v26  ;;  %v3195_v37 = vmul.u32.u64.high %v3157_v14, %v1451_v26, %v3194_v44 }
 0x135   : > { %v2664_v27 = vpop.eup %2663  ;;  %vm2413_vm4 = vcmp.lt.s32.totalorder %v2412_v23, 0  ;;  %v1455_v36 = vsel %vm1441_vm3, %v1452_v34, %v1454_v30  ;;  %v892_v39 = vshrl.u32 %v891_v50, 23  ;;  %v1447_v61 = vsel %vm1441_vm3, %v1444_v25, %v1446_v28 }
 0x136   : > { %v2666_v46 = vpop.eup %2665  ;;  %v884_v41 = vxor.u32 2147483648, %v2664_v27  ;;  %v647_v60 = vsel %vm2413_vm4, 0, %v2412_v23  ;;  %v3203_v53 = vmul.u32.u64.low %v3157_v14, %v1455_v36  ;;  %v3204_v33 = vmul.u32.u64.high %v3157_v14, %v1455_v36, %v3203_v53 }
 0x137   : > { %v881_v47 = vxor.u32 2147483648, %v2666_v46  ;;  %v648_v59 = vsub.s32 32, %v647_v60  ;;  %v652_v3 = vsub.s32 4294967266, %v647_v60  ;;  %v1710_v0 = vand.u32 3, %v3131_v35  ;;  %v2511_v35 = vpop.f32.mrf.mxu1 }
 0x138   : > { %v885_v20 = vsel %vm883_vm11, %v884_v41, %v2666_v46  ;;  %v1466_v50 = vadd.s32 1, %v3195_v37  ;;  %v2422_v2 = vadd.s32 4294967169, %v892_v39  ;;  %v649_v18 = vshll.u32 %v3144_v62, %v647_v60 }
 0x139   : > { %v882_v43 = vsel %vm880_vm13, %v2664_v27, %v881_v47  ;;  %v650_v5 = vshrl.u32 %v632_v6, %v648_v59  ;;  %v653_v40 = vadd.s32 127, %v652_v3  ;;  %v665_v49 = vsel %vm3174_vm1, 0, %v663_v22 }
 0x13a   : > { %v886_v4 = vsel %vm879_vm15, %v882_v43, %v885_v20  ;;  %v1463_v9 = vmul.u32 %v3157_v14, %v1447_v61  ;;  %vm1465_vm5 = vc.u32 %v3204_v33, %v3194_v44  ;;  %v898_v10 = vadd.s32 1, %v2422_v2 }
 0x13b   : > { %v887_v7 = vsel %vm876_vm0, nan, %v886_v4  ;;  %v651_v51 = vor.u32 %v650_v5, %v649_v18  ;;  %v654_v62 = vshll.u32 %v653_v40, 23  ;;  %v1467_v6 = vsel %vm1465_vm5, %v1466_v50, %v3195_v37 }
 0x13c   : > { %2242 = vst [vmem:[%s3224_s26 + $0x10] sm:$0xff] %v887_v7  ;;  %v1468_v15 = vadd.s32 %v1467_v6, %v1463_v9  ;;  %v888_v13 = vand.u32 2147483647, %v3124_v29  ;;  %vm1715_vm6 = vcmp.eq.s32.totalorder %v1710_v0, 2  ;;  %vm899_vm7 = vcmp.gt.s32.totalorder %v898_v10, 0 }
 0x13d   : > { %v2668_v57 = vpop.eup %2667  ;;  %v655_v63 = vor.u32 4788187, %v654_v62  ;;  %v3230_v14 = vadd.f32 %v2511_v35, %v2918_v12  ;;  %v669_v32 = vadd.s32 3, %v665_v49  ;;  %v900_v21 = vsel %vm899_vm7, %v898_v10, 0 }
 0x13e   : > { %v2670_v11 = vpop.eup %2669  ;;  %v1716_v17 = vxor.u32 2147483648, %v2668_v57  ;;  %v1469_v19 = vadd.s32 536870912, %v1468_v15  ;;  %v658_v38 = vcvt.s32.f32 %v651_v51  ;;  %v902_v34 = vand.u32 31, %v900_v21 }
 0x13f   : > { %v1713_v55 = vxor.u32 2147483648, %v2670_v11  ;;  %v656_v22 = vand.u32 2147483647, %v655_v63  ;;  %vm1712_vm8 = vcmp.eq.s32.totalorder %v1710_v0, 0  ;;  %v895_v26 = vand.u32 8388607, %v888_v13 }
 0x140   : > { %v1717_v23 = vsel %vm1715_vm6, %v1716_v17, %v2670_v11  ;;  %v3232_v25 = vshrl.u32 %v1469_v19, 30  ;;  %vm1711_vm9 = vcmp.lt.s32.totalorder %v1710_v0, 2  ;;  %v903_v28 = vsub.s32 32, %v902_v34 }
 0x141   : > { %v1714_v8 = vsel %vm1712_vm8, %v2668_v57, %v1713_v55  ;;  %v659_v27 = vmul.f32 %v658_v38, %v656_v22  ;;  %vm1708_vm11 = vweird.f32 %v2924_v16  ;;  %v3238_v36 = vand.u32 3, %v669_v32 }
 0x142   : > { %v1718_v30 = vsel %vm1711_vm9, %v1714_v8, %v1717_v23  ;;  %v1471_v37 = vshll.u32 %v3232_v25, 30  ;;  %v906_v39 = vshrl.u32 %v2808_v52, %v903_v28  ;;  %v896_v60 = vor.u32 8388608, %v895_v26 }
 0x143   : > { %v1719_v46 = vsel %vm1708_vm11, nan, %v1718_v30  ;;  %v660_v41 = vxor.u32 2147483648, %v659_v27  ;;  %v909_v53 = vshrl.u32 %v2809_v54, %v903_v28  ;;  %v1723_v20 = vand.u32 2139095040, %v3230_v14 }
 0x144   : > { %2250 = vst [vmem:[%s3224_s26 + $0x50] sm:$0xff] %v1719_v46  ;;  %v3242_v47 = vsub.s32 %v1468_v15, %v1471_v37  ;;  %v901_v59 = vshrl.u32 %v900_v21, 5  ;;  %v905_v3 = vshll.u32 %v2807_v48, %v902_v34  ;;  %v912_v61 = vshrl.u32 %v2810_v56, %v903_v28 }
 0x145   : > { %v661_v16 = vsel %vm578_vm10, %v660_v41, %v659_v27  ;;  %v908_v50 = vshll.u32 %v2808_v52, %v902_v34  ;;  %v911_v2 = vshll.u32 %v2809_v54, %v902_v34  ;;  %v914_v18 = vshll.u32 %v2810_v56, %v902_v34 }
 0x146   : > { %v664_v43 = vsel %vm3174_vm1, %v2933_v24, %v661_v16  ;;  %v1474_v0 = vsub.s32 0, %v3242_v47  ;;  %v907_v4 = vor.u32 %v906_v39, %v905_v3  ;;  %v915_v5 = vshrl.u32 %v2811_v58, %v903_v28 }
 0x147   : > { %2671 = vcosq.f32 %v664_v43  ;;  %v910_v7 = vor.u32 %v909_v53, %v908_v50  ;;  %v913_v49 = vor.u32 %v912_v61, %v911_v2  ;;  %v917_v31 = vshll.u32 %v2811_v58, %v902_v34 }
 0x148   : > { %2673 = vsinq.f32 %v664_v43  ;;  %v2443_v40 = vmin.u32 %v1474_v0, %v3242_v47  ;;  %v916_v9 = vor.u32 %v915_v5, %v914_v18  ;;  %v918_v35 = vshrl.u32 %v2812_v1, %v903_v28 }
 0x149   : > { %v936_v51 = vshll.u32 %v896_v60, 8  ;;  %v904_v6 = vshrl.u32 %v2807_v48, %v903_v28  ;;  %vm920_vm10 = vcmp.lt.s32.totalorder %v901_v59, 1  ;;  %v1724_v10 = vshrl.u32 %v1723_v20, 23 }
 0x14a   : > { %v1476_v62 = vclz %v2443_v40  ;;  %vm1410_vm12 = vcmp.lt.s32.totalorder %v2940_v42, 0  ;;  %v919_v15 = vor.u32 %v918_v35, %v917_v31  ;;  %vm921_vm13 = vcmp.lt.s32.totalorder %v901_v59, 2 }
 0x14b   : > { %vm922_vm14 = vcmp.lt.s32.totalorder %v901_v59, 3  ;;  %vm923_vm15 = vcmp.lt.s32.totalorder %v901_v59, 4  ;;  %v928_v11 = vsel %vm920_vm10, %v907_v4, %v910_v7  ;;  %v924_v32 = vsel %vm920_vm10, %v904_v6, %v907_v4 }
 0x14c   : > { %v2444_v57 = vadd.s32 4294967294, %v1476_v62  ;;  %v925_v63 = vsel %vm923_vm15, %v913_v49, 2102212464  ;;  %v929_v17 = vsel %vm923_vm15, %v916_v9, 920167782  ;;  %v932_v21 = vsel %vm920_vm10, %v910_v7, %v913_v49 }
 0x14d   : > { %v930_v19 = vsel %vm922_vm14, %v913_v49, %v929_v17  ;;  %v933_v55 = vsel %vm923_vm15, %v919_v15, 1326507024  ;;  %vm3265_vm0 = vcmp.le.f32.partialorder %v1408_v45, 0.7853982  ;;  %v926_v38 = vsel %vm922_vm14, %v910_v7, %v925_v63 }
 0x14e   : > { %vm2445_vm1 = vcmp.lt.s32.totalorder %v2444_v57, 0  ;;  %v931_v34 = vsel %vm921_vm13, %v928_v11, %v930_v19  ;;  %v934_v23 = vsel %vm922_vm14, %v916_v9, %v933_v55  ;;  %v1464_v30 = vadd.s32 %v3194_v44, %v3204_v33 }
 0x14f   : > { %v1479_v26 = vsel %vm2445_vm1, 0, %v2444_v57  ;;  %v935_v8 = vsel %vm921_vm13, %v932_v21, %v934_v23  ;;  %v3271_v27 = vmul.u32.u64.low %v936_v51, %v931_v34  ;;  %v3272_v28 = vmul.u32.u64.high %v936_v51, %v931_v34, %v3271_v27 }
 0x150   : > { %v1480_v37 = vsub.s32 32, %v1479_v26  ;;  %v1484_v45 = vsub.s32 4294967266, %v1479_v26  ;;  %v1494_v46 = vsub.s32 4, %v3232_v25  ;;  %v1720_v60 = vand.u32 2147483647, %v3230_v14 }
 0x151   : > { %v3278_v41 = vmul.u32.u64.low %v936_v51, %v935_v8  ;;  %v3279_v39 = vmul.u32.u64.high %v936_v51, %v935_v8, %v3278_v41  ;;  %v2454_v53 = vadd.s32 4294967169, %v1724_v10  ;;  %v1481_v20 = vshll.u32 %v3242_v47, %v1479_v26  ;;  %v402_v10 = vpop.f32.mrf.mxu0 }
 0x152   : > { %v1482_v16 = vshrl.u32 %v1464_v30, %v1480_v37  ;;  %v1485_v3 = vadd.s32 127, %v1484_v45  ;;  %v927_v61 = vsel %vm921_vm13, %v924_v32, %v926_v38  ;;  %vm671_vm2 = vcmp.lt.s32.totalorder %v3238_v36, 2 }
 0x153   : > { %vm672_vm3 = vcmp.eq.s32.totalorder %v3238_v36, 0  ;;  %v946_v44 = vadd.s32 1, %v3272_v28  ;;  %v1730_v33 = vadd.s32 1, %v2454_v53  ;;  %vm675_vm4 = vcmp.eq.s32.totalorder %v3238_v36, 2 }
 0x154   : > { %v2672_v43 = vpop.eup %2671  ;;  %v1483_v0 = vor.u32 %v1482_v16, %v1481_v20  ;;  %v1486_v50 = vshll.u32 %v1485_v3, 23  ;;  %v1495_v47 = vsel %vm1410_vm12, %v1494_v46, %v3232_v25  ;;  %v943_v59 = vmul.u32 %v936_v51, %v927_v61 }
 0x155   : > { %v2674_v2 = vpop.eup %2673  ;;  %v676_v4 = vxor.u32 2147483648, %v2672_v43  ;;  %vm945_vm5 = vc.u32 %v3279_v39, %v3271_v27  ;;  %vm1731_vm6 = vcmp.gt.s32.totalorder %v1730_v33, 0  ;;  %v1727_v7 = vand.u32 8388607, %v1720_v60 }
 0x156   : > { %v673_v18 = vxor.u32 2147483648, %v2674_v2  ;;  %v1487_v5 = vor.u32 4788187, %v1486_v50  ;;  %v947_v40 = vsel %vm945_vm5, %v946_v44, %v3272_v28  ;;  %v1497_v9 = vsel %vm3265_vm0, 0, %v1495_v47 }
 0x157   : > { %v677_v49 = vsel %vm675_vm4, %v676_v4, %v2674_v2  ;;  %v948_v25 = vadd.s32 %v947_v40, %v943_v59  ;;  %v1732_v31 = vsel %vm1731_vm6, %v1730_v33, 0  ;;  %v1490_v62 = vcvt.s32.f32 %v1483_v0 }
 0x158   : > { %v674_v35 = vsel %vm672_vm3, %v2672_v43, %v673_v18  ;;  %v1488_v51 = vand.u32 2147483647, %v1487_v5  ;;  %v1734_v6 = vand.u32 31, %v1732_v31  ;;  %vm668_vm7 = vweird.f32 %v2933_v24 }
 0x159   : > { %v678_v15 = vsel %vm671_vm2, %v674_v35, %v677_v49  ;;  %v949_v57 = vadd.s32 536870912, %v948_v25  ;;  %v1501_v17 = vadd.s32 3, %v1497_v9  ;;  %v1728_v21 = vor.u32 8388608, %v1727_v7 }
 0x15a   : > { %v679_v63 = vsel %vm668_vm7, nan, %v678_v15  ;;  %v1491_v11 = vmul.f32 %v1490_v62, %v1488_v51  ;;  %v1735_v32 = vsub.s32 32, %v1734_v6  ;;  %v1737_v55 = vshll.u32 %v2807_v48, %v1734_v6 }
 0x15b   : > { %2240 = vst [vmem:[%s3224_s26] sm:$0xff] %v679_v63  ;;  %v3304_v19 = vshrl.u32 %v949_v57, 30  ;;  %v3308_v38 = vadd.f32 %v2918_v12, %v402_v10  ;;  %v1740_v36 = vshll.u32 %v2808_v52, %v1734_v6  ;;  %v1743_v8 = vshll.u32 %v2809_v54, %v1734_v6 }
 0x15c   : > { %v1492_v34 = vxor.u32 2147483648, %v1491_v11  ;;  %v1738_v24 = vshrl.u32 %v2808_v52, %v1735_v32  ;;  %v1741_v23 = vshrl.u32 %v2809_v54, %v1735_v32  ;;  %v1744_v28 = vshrl.u32 %v2810_v56, %v1735_v32 }
 0x15d   : > { %v951_v26 = vshll.u32 %v3304_v19, 30  ;;  %v1747_v30 = vshrl.u32 %v2811_v58, %v1735_v32  ;;  %v1733_v12 = vshrl.u32 %v1732_v31, 5  ;;  %v1746_v46 = vshll.u32 %v2810_v56, %v1734_v6 }
 0x15e   : > { %v1493_v37 = vsel %vm1410_vm12, %v1492_v34, %v1491_v11  ;;  %v1739_v45 = vor.u32 %v1738_v24, %v1737_v55  ;;  %v1742_v20 = vor.u32 %v1741_v23, %v1740_v36  ;;  %v1745_v16 = vor.u32 %v1744_v28, %v1743_v8 }
 0x15f   : > { %v1496_v41 = vsel %vm3265_vm0, %v2940_v42, %v1493_v37  ;;  %v3323_v53 = vsub.s32 %v948_v25, %v951_v26  ;;  %v1748_v3 = vor.u32 %v1747_v30, %v1746_v46  ;;  %v1749_v61 = vshll.u32 %v2811_v58, %v1734_v6 }
 0x160   : > { %2675 = vcosq.f32 %v1496_v41  ;;  %v1750_v44 = vshrl.u32 %v2812_v1, %v1735_v32  ;;  %v3327_v33 = vand.u32 3, %v1501_v17  ;;  %vm890_vm8 = vcmp.lt.s32.totalorder %v3124_v29, 0 }
 0x161   : > { %2677 = vsinq.f32 %v1496_v41  ;;  %v954_v43 = vsub.s32 0, %v3323_v53  ;;  %vm1755_vm9 = vcmp.lt.s32.totalorder %v1733_v12, 4  ;;  %v1768_v22 = vshll.u32 %v1728_v21, 8 }
 0x162   : > { %v1751_v0 = vor.u32 %v1750_v44, %v1749_v61  ;;  %v683_v50 = vand.u32 2139095040, %v3308_v38  ;;  %v1736_v2 = vshrl.u32 %v2807_v48, %v1735_v32  ;;  %vm1752_vm11 = vcmp.lt.s32.totalorder %v1733_v12, 1 }
 0x163   : > { %v2423_v47 = vmin.u32 %v954_v43, %v3323_v53  ;;  %v1757_v4 = vsel %vm1755_vm9, %v1745_v16, 2102212464  ;;  %vm1753_vm10 = vcmp.lt.s32.totalorder %v1733_v12, 2  ;;  %v1760_v59 = vsel %vm1752_vm11, %v1739_v45, %v1742_v20 }
 0x164   : > { %v1761_v18 = vsel %vm1755_vm9, %v1748_v3, 920167782  ;;  %v680_v5 = vand.u32 2147483647, %v3308_v38  ;;  %vm1754_vm12 = vcmp.lt.s32.totalorder %v1733_v12, 3  ;;  %v1756_v7 = vsel %vm1752_vm11, %v1736_v2, %v1739_v45 }
 0x165   : > { %v956_v40 = vclz %v2423_v47  ;;  %v1764_v49 = vsel %vm1752_vm11, %v1742_v20, %v1745_v16  ;;  %v1758_v9 = vsel %vm1754_vm12, %v1742_v20, %v1757_v4  ;;  %v1762_v25 = vsel %vm1754_vm12, %v1745_v16, %v1761_v18 }
 0x166   : > { %v1765_v31 = vsel %vm1755_vm9, %v1751_v0, 1326507024  ;;  %v684_v35 = vshrl.u32 %v683_v50, 23  ;;  %v974_v62 = vsub.s32 4, %v3304_v19  ;;  %v1763_v6 = vsel %vm1753_vm10, %v1760_v59, %v1762_v25 }
 0x167   : > { %v2424_v51 = vadd.s32 4294967294, %v956_v40  ;;  %v1766_v10 = vsel %vm1754_vm12, %v1748_v3, %v1765_v31  ;;  %v3341_v57 = vmul.u32.u64.low %v1768_v22, %v1763_v6  ;;  %v3342_v63 = vmul.u32.u64.high %v1768_v22, %v1763_v6, %v3341_v57 }
 0x168   : > { %v1767_v15 = vsel %vm1753_vm10, %v1764_v49, %v1766_v10  ;;  %v2414_v11 = vadd.s32 4294967169, %v684_v35  ;;  %v1759_v17 = vsel %vm1753_vm10, %v1756_v7, %v1758_v9  ;;  %vm1500_vm14 = vweird.f32 %v2940_v42 }
 0x169   : > { %vm2425_vm13 = vcmp.lt.s32.totalorder %v2424_v51, 0  ;;  %v3346_v32 = vmul.u32.u64.low %v1768_v22, %v1767_v15  ;;  %v3347_v21 = vmul.u32.u64.high %v1768_v22, %v1767_v15, %v3346_v32  ;;  %vm1507_vm15 = vcmp.eq.s32.totalorder %v3327_v33, 2 }
 0x16a   : > { %vm3353_vm0 = vcmp.le.f32.partialorder %v888_v13, 0.7853982  ;;  %v959_v34 = vsel %vm2425_vm13, 0, %v2424_v51  ;;  %v690_v24 = vadd.s32 1, %v2414_v11  ;;  %v944_v36 = vadd.s32 %v3271_v27, %v3279_v39  ;;  %v434_v27 = vpop.f32.mrf.mxu1 }
 0x16b   : > { %v960_v23 = vsub.s32 32, %v959_v34  ;;  %v964_v26 = vsub.s32 4294967266, %v959_v34  ;;  %v975_v8 = vsel %vm890_vm8, %v974_v62, %v3304_v19  ;;  %v1775_v28 = vmul.u32 %v1768_v22, %v1759_v17  ;;  %v3377_v22 = vld [vmem:[%s4117_s2] ss:$0 sm:$0xff] }
 0x16c   : > { %v1778_v30 = vadd.s32 1, %v3342_v63  ;;  %v687_v13 = vand.u32 8388607, %v680_v5  ;;  %vm691_vm1 = vcmp.gt.s32.totalorder %v690_v24, 0  ;;  %v961_v12 = vshll.u32 %v3323_v53, %v959_v34 }
 0x16d   : > { %v2676_v37 = vpop.eup %2675  ;;  %v962_v45 = vshrl.u32 %v944_v36, %v960_v23  ;;  %v965_v46 = vadd.s32 127, %v964_v26  ;;  %vm1777_vm2 = vc.u32 %v3347_v21, %v3341_v57  ;;  %v977_v19 = vsel %vm3353_vm0, 0, %v975_v8 }
 0x16e   : > { %v2678_v39 = vpop.eup %2677  ;;  %v1508_v41 = vxor.u32 2147483648, %v2676_v37  ;;  %v1779_v20 = vsel %vm1777_vm2, %v1778_v30, %v3342_v63  ;;  %v692_v16 = vsel %vm691_vm1, %v690_v24, 0  ;;  %vm1504_vm3 = vcmp.eq.s32.totalorder %v3327_v33, 0 }
 0x16f   : > { %v1505_v3 = vxor.u32 2147483648, %v2678_v39  ;;  %v963_v61 = vor.u32 %v962_v45, %v961_v12  ;;  %v966_v44 = vshll.u32 %v965_v46, 23  ;;  %v1780_v43 = vadd.s32 %v1779_v20, %v1775_v28 }
 0x170   : > { %v1509_v53 = vsel %vm1507_vm15, %v1508_v41, %v2678_v39  ;;  %v694_v0 = vand.u32 31, %v692_v16  ;;  %v3380_v50 = vadd.f32 %v3377_v22, %v434_v27  ;;  %vm1503_vm4 = vcmp.lt.s32.totalorder %v3327_v33, 2 }
 0x171   : > { %v1506_v47 = vsel %vm1504_vm3, %v2676_v37, %v1505_v3  ;;  %v967_v2 = vor.u32 4788187, %v966_v44  ;;  %v1781_v4 = vadd.s32 536870912, %v1780_v43  ;;  %v3383_v18 = vadd.s32 3, %v977_v19 }
 0x172   : > { %v1510_v59 = vsel %vm1503_vm4, %v1506_v47, %v1509_v53  ;;  %v688_v40 = vor.u32 8388608, %v687_v13  ;;  %v695_v7 = vsub.s32 32, %v694_v0  ;;  %v970_v25 = vcvt.s32.f32 %v963_v61 }
 0x173   : > { %v1511_v49 = vsel %vm1500_vm14, nan, %v1510_v59  ;;  %v968_v9 = vand.u32 2147483647, %v967_v2  ;;  %v3387_v31 = vshrl.u32 %v1781_v4, 30  ;;  %v1515_v62 = vand.u32 2139095040, %v3380_v50 }
 0x174   : > { %2248 = vst [vmem:[%s3224_s26 + $0x40] sm:$0xff] %v1511_v49  ;;  %v698_v35 = vshrl.u32 %v2808_v52, %v695_v7  ;;  %v701_v33 = vshrl.u32 %v2809_v54, %v695_v7  ;;  %v704_v51 = vshrl.u32 %v2810_v56, %v695_v7  ;;  %v697_v15 = vshll.u32 %v2807_v48, %v694_v0 }
 0x175   : > { %v971_v6 = vmul.f32 %v970_v25, %v968_v9  ;;  %v1783_v10 = vshll.u32 %v3387_v31, 30  ;;  %v700_v42 = vshll.u32 %v2808_v52, %v694_v0  ;;  %v693_v63 = vshrl.u32 %v692_v16, 5 }
 0x176   : > { %v703_v11 = vshll.u32 %v2809_v54, %v694_v0  ;;  %v706_v17 = vshll.u32 %v2810_v56, %v694_v0  ;;  %v707_v32 = vshrl.u32 %v2811_v58, %v695_v7  ;;  %v699_v36 = vor.u32 %v698_v35, %v697_v15 }
 0x177   : > { %v972_v34 = vxor.u32 2147483648, %v971_v6  ;;  %v3400_v24 = vsub.s32 %v1780_v43, %v1783_v10  ;;  %v702_v23 = vor.u32 %v701_v33, %v700_v42  ;;  %v709_v28 = vshll.u32 %v2811_v58, %v694_v0 }
 0x178   : > { %v705_v26 = vor.u32 %v704_v51, %v703_v11  ;;  %v708_v8 = vor.u32 %v707_v32, %v706_v17  ;;  %v710_v30 = vshrl.u32 %v2812_v1, %v695_v7  ;;  %v728_v12 = vshll.u32 %v688_v40, 8 }
 0x179   : > { %v973_v13 = vsel %vm890_vm8, %v972_v34, %v971_v6  ;;  %v1786_v37 = vsub.s32 0, %v3400_v24  ;;  %v1512_v45 = vand.u32 2147483647, %v3380_v50  ;;  %v696_v27 = vshrl.u32 %v2807_v48, %v695_v7 }
 0x17a   : > { %v976_v46 = vsel %vm3353_vm0, %v3124_v29, %v973_v13  ;;  %v711_v39 = vor.u32 %v710_v30, %v709_v28  ;;  %v1516_v41 = vshrl.u32 %v1515_v62, 23  ;;  %vm712_vm5 = vcmp.lt.s32.totalorder %v693_v63, 1 }
 0x17b   : > { %2679 = vcosq.f32 %v976_v46  ;;  %v2455_v19 = vmin.u32 %v1786_v37, %v3400_v24  ;;  %vm715_vm6 = vcmp.lt.s32.totalorder %v693_v63, 4  ;;  %v720_v16 = vsel %vm712_vm5, %v699_v36, %v702_v23 }
 0x17c   : > { %2681 = vsinq.f32 %v976_v46  ;;  %v717_v20 = vsel %vm715_vm6, %v705_v26, 2102212464  ;;  %v721_v3 = vsel %vm715_vm6, %v708_v8, 920167782  ;;  %vm713_vm7 = vcmp.lt.s32.totalorder %v693_v63, 2 }
 0x17d   : > { %v1788_v61 = vclz %v2455_v19  ;;  %vm714_vm8 = vcmp.lt.s32.totalorder %v693_v63, 3  ;;  %v716_v44 = vsel %vm712_vm5, %v696_v27, %v699_v36  ;;  %v724_v53 = vsel %vm712_vm5, %v702_v23, %v705_v26  ;;  %v2506_v27 = vpop.f32.mrf.mxu0 }
 0x17e   : > { %v718_v43 = vsel %vm714_vm8, %v702_v23, %v717_v20  ;;  %v722_v55 = vsel %vm714_vm8, %v705_v26, %v721_v3  ;;  %v725_v0 = vsel %vm715_vm6, %v711_v39, 1326507024  ;;  %v1806_v2 = vsub.s32 4, %v3387_v31 }
 0x17f   : > { %v2456_v47 = vadd.s32 4294967294, %v1788_v61  ;;  %v723_v4 = vsel %vm713_vm7, %v720_v16, %v722_v55  ;;  %v726_v59 = vsel %vm714_vm8, %v708_v8, %v725_v0  ;;  %v719_v40 = vsel %vm713_vm7, %v716_v44, %v718_v43 }
 0x180   : > { %v727_v7 = vsel %vm713_vm7, %v724_v53, %v726_v59  ;;  %v3414_v49 = vmul.u32.u64.low %v728_v12, %v723_v4  ;;  %v3415_v9 = vmul.u32.u64.high %v728_v12, %v723_v4, %v3414_v49  ;;  %v2446_v33 = vadd.s32 4294967169, %v1516_v41 }
 0x181   : > { %vm2457_vm9 = vcmp.lt.s32.totalorder %v2456_v47, 0  ;;  %v3417_v25 = vmul.u32.u64.low %v728_v12, %v727_v7  ;;  %v3418_v35 = vmul.u32.u64.high %v728_v12, %v727_v7, %v3417_v25  ;;  %vm3422_vm11 = vcmp.le.f32.partialorder %v1720_v60, 0.7853982 }
 0x182   : > { %vm1722_vm10 = vcmp.lt.s32.totalorder %v3230_v14, 0  ;;  %v1776_v62 = vadd.s32 %v3341_v57, %v3347_v21  ;;  %v1791_v6 = vsel %vm2457_vm9, 0, %v2456_v47  ;;  %v1522_v63 = vadd.s32 1, %v2446_v33 }
 0x183   : > { %v1792_v10 = vsub.s32 32, %v1791_v6  ;;  %v1796_v15 = vsub.s32 4294967266, %v1791_v6  ;;  %v1807_v42 = vsel %vm1722_vm10, %v1806_v2, %v3387_v31  ;;  %v982_v11 = vand.u32 3, %v3383_v18 }
 0x184   : > { %v735_v17 = vmul.u32 %v728_v12, %v719_v40  ;;  %v738_v60 = vadd.s32 1, %v3415_v9  ;;  %v1519_v32 = vand.u32 8388607, %v1512_v45  ;;  %v1793_v34 = vshll.u32 %v3400_v24, %v1791_v6 }
 0x185   : > { %v1794_v36 = vshrl.u32 %v1776_v62, %v1792_v10  ;;  %v1797_v57 = vadd.s32 127, %v1796_v15  ;;  %vm737_vm12 = vc.u32 %v3418_v35, %v3414_v49  ;;  %v1809_v21 = vsel %vm3422_vm11, 0, %v1807_v42 }
 0x186   : > { %v739_v31 = vsel %vm737_vm12, %v738_v60, %v3415_v9  ;;  %vm1523_vm13 = vcmp.gt.s32.totalorder %v1522_v63, 0  ;;  %vm980_vm14 = vweird.f32 %v3124_v29  ;;  %vm983_vm15 = vcmp.lt.s32.totalorder %v982_v11, 2 }
 0x187   : > { %v1795_v23 = vor.u32 %v1794_v36, %v1793_v34  ;;  %v1798_v18 = vshll.u32 %v1797_v57, 23  ;;  %v740_v26 = vadd.s32 %v739_v31, %v735_v17  ;;  %v1524_v8 = vsel %vm1523_vm13, %v1522_v63, 0 }
 0x188   : > { %v2680_v28 = vpop.eup %2679  ;;  %vm984_vm0 = vcmp.eq.s32.totalorder %v982_v11, 0  ;;  %v1526_v24 = vand.u32 31, %v1524_v8  ;;  %v1520_v46 = vor.u32 8388608, %v1519_v32  ;;  %vm987_vm1 = vcmp.eq.s32.totalorder %v982_v11, 2 }
 0x189   : > { %v2682_v30 = vpop.eup %2681  ;;  %v988_v13 = vxor.u32 2147483648, %v2680_v28  ;;  %v1799_v37 = vor.u32 4788187, %v1798_v18  ;;  %v741_v12 = vadd.s32 536870912, %v740_v26  ;;  %v3442_v41 = vadd.s32 3, %v1809_v21 }
 0x18a   : > { %v985_v39 = vxor.u32 2147483648, %v2682_v30  ;;  %v1527_v19 = vsub.s32 32, %v1526_v24  ;;  %v1802_v3 = vcvt.s32.f32 %v1795_v23  ;;  %v3446_v43 = vadd.s32 %v3414_v49, %v3418_v35 }
 0x18b   : > { %v989_v20 = vsel %vm987_vm1, %v988_v13, %v2682_v30  ;;  %v1800_v16 = vand.u32 2147483647, %v1799_v37  ;;  %v742_v61 = vshrl.u32 %v741_v12, 30  ;;  %v3450_v53 = vadd.f32 %v3377_v22, %v2506_v27 }
 0x18c   : > { %v986_v44 = vsel %vm984_vm0, %v2680_v28, %v985_v39  ;;  %v1530_v55 = vshrl.u32 %v2808_v52, %v1527_v19  ;;  %v3453_v4 = vshll.u32 %v1520_v46, 8  ;;  %v1529_v40 = vshll.u32 %v2807_v48, %v1526_v24 }
 0x18d   : > { %v990_v0 = vsel %vm983_vm15, %v986_v44, %v989_v20  ;;  %v1803_v47 = vmul.f32 %v1802_v3, %v1800_v16  ;;  %v743_v2 = vshll.u32 %v742_v61, 30  ;;  %v1533_v7 = vshrl.u32 %v2809_v54, %v1527_v19 }
 0x18e   : > { %v991_v59 = vsel %vm980_vm14, nan, %v990_v0  ;;  %v1536_v49 = vshrl.u32 %v2810_v56, %v1527_v19  ;;  %v1525_v35 = vshrl.u32 %v1524_v8, 5  ;;  %v1532_v33 = vshll.u32 %v2808_v52, %v1526_v24 }
 0x18f   : > { %2243 = vst [vmem:[%s3224_s26 + $0x18] sm:$0xff] %v991_v59  ;;  %v1804_v9 = vxor.u32 2147483648, %v1803_v47  ;;  %v3461_v25 = vsub.s32 %v740_v26, %v743_v2  ;;  %v1531_v62 = vor.u32 %v1530_v55, %v1529_v40  ;;  %v1535_v6 = vshll.u32 %v2809_v54, %v1526_v24 }
 0x190   : > { %v1538_v10 = vshll.u32 %v2810_v56, %v1526_v24  ;;  %v1539_v29 = vshrl.u32 %v2811_v58, %v1527_v19  ;;  %vm682_vm2 = vcmp.lt.s32.totalorder %v3308_v38, 0  ;;  %v1541_v63 = vshll.u32 %v2811_v58, %v1526_v24 }
 0x191   : > { %v1805_v15 = vsel %vm1722_vm10, %v1804_v9, %v1803_v47  ;;  %v746_v42 = vsub.s32 0, %v3461_v25  ;;  %v1542_v11 = vshrl.u32 %v2812_v1, %v1527_v19  ;;  %v1534_v60 = vor.u32 %v1533_v7, %v1532_v33 }
 0x192   : > { %v1808_v17 = vsel %vm3422_vm11, %v3230_v14, %v1805_v15  ;;  %v1537_v32 = vor.u32 %v1536_v49, %v1535_v6  ;;  %v1540_v34 = vor.u32 %v1539_v29, %v1538_v10  ;;  %v1203_v21 = vand.u32 2139095040, %v3450_v53 }
 0x193   : > { %2683 = vcosq.f32 %v1808_v17  ;;  %v2415_v36 = vmin.u32 %v746_v42, %v3461_v25  ;;  %v1543_v57 = vor.u32 %v1542_v11, %v1541_v63  ;;  %v766_v31 = vsub.s32 4, %v742_v61 }
 0x194   : > { %2685 = vsinq.f32 %v1808_v17  ;;  %v1528_v23 = vshrl.u32 %v2807_v48, %v1527_v19  ;;  %vm1544_vm3 = vcmp.lt.s32.totalorder %v1525_v35, 1  ;;  %vm1545_vm4 = vcmp.lt.s32.totalorder %v1525_v35, 2 }
 0x195   : > { %v748_v18 = vclz %v2415_v36  ;;  %vm1546_vm5 = vcmp.lt.s32.totalorder %v1525_v35, 3  ;;  %vm1547_vm6 = vcmp.lt.s32.totalorder %v1525_v35, 4  ;;  %v1552_v26 = vsel %vm1544_vm3, %v1531_v62, %v1534_v60 }
 0x196   : > { %v1549_v51 = vsel %vm1547_vm6, %v1537_v32, 2102212464  ;;  %v1553_v8 = vsel %vm1547_vm6, %v1540_v34, 920167782  ;;  %v1556_v28 = vsel %vm1544_vm3, %v1534_v60, %v1537_v32  ;;  %v1548_v30 = vsel %vm1544_vm3, %v1528_v23, %v1531_v62  ;;  %v2514_v23 = vpop.f32.mrf.mxu1 }
 0x197   : > { %v2416_v24 = vadd.s32 4294967294, %v748_v18  ;;  %v1554_v13 = vsel %vm1546_vm5, %v1537_v32, %v1553_v8  ;;  %v1557_v37 = vsel %vm1547_vm6, %v1543_v57, 1326507024  ;;  %v1550_v12 = vsel %vm1546_vm5, %v1534_v60, %v1549_v51 }
 0x198   : > { %v1555_v46 = vsel %vm1545_vm4, %v1552_v26, %v1554_v13  ;;  %v1558_v27 = vsel %vm1546_vm5, %v1540_v34, %v1557_v37  ;;  %v1204_v39 = vshrl.u32 %v1203_v21, 23  ;;  %v767_v44 = vsel %vm682_vm2, %v766_v31, %v742_v61 }
 0x199   : > { %vm2417_vm7 = vcmp.lt.s32.totalorder %v2416_v24, 0  ;;  %v1559_v19 = vsel %vm1545_vm4, %v1556_v28, %v1558_v27  ;;  %v3482_v20 = vmul.u32.u64.low %v3453_v4, %v1555_v46  ;;  %v3483_v16 = vmul.u32.u64.high %v3453_v4, %v1555_v46, %v3482_v20 }
 0x19a   : > { %v751_v3 = vsel %vm2417_vm7, 0, %v2416_v24  ;;  %v3489_v55 = vmul.u32.u64.low %v3453_v4, %v1559_v19  ;;  %v3490_v0 = vmul.u32.u64.high %v3453_v4, %v1559_v19, %v3489_v55  ;;  %v1551_v59 = vsel %vm1545_vm4, %v1548_v30, %v1550_v12 }
 0x19b   : > { %v752_v47 = vsub.s32 32, %v751_v3  ;;  %v756_v2 = vsub.s32 4294967266, %v751_v3  ;;  %v2434_v40 = vadd.s32 4294967169, %v1204_v39  ;;  %vm3495_vm8 = vcmp.le.f32.partialorder %v680_v5, 0.7853982 }
 0x19c   : > { %v753_v49 = vshll.u32 %v3461_v25, %v751_v3  ;;  %v1200_v9 = vand.u32 2147483647, %v3450_v53  ;;  %v1570_v62 = vadd.s32 1, %v3483_v16  ;;  %v1814_v35 = vand.u32 3, %v3442_v41 }
 0x19d   : > { %v754_v61 = vshrl.u32 %v3446_v43, %v752_v47  ;;  %v757_v33 = vadd.s32 127, %v756_v2  ;;  %v1210_v6 = vadd.s32 1, %v2434_v40  ;;  %v769_v10 = vsel %vm3495_vm8, 0, %v767_v44 }
 0x19e   : > { %v1567_v5 = vmul.u32 %v3453_v4, %v1551_v59  ;;  %vm1569_vm9 = vc.u32 %v3490_v0, %v3482_v20  ;;  %vm1812_vm10 = vweird.f32 %v3230_v14  ;;  %v773_v60 = vadd.s32 3, %v769_v10 }
 0x19f   : > { %v755_v29 = vor.u32 %v754_v61, %v753_v49  ;;  %v758_v25 = vshll.u32 %v757_v33, 23  ;;  %v1571_v15 = vsel %vm1569_vm9, %v1570_v62, %v3483_v16  ;;  %vm1211_vm11 = vcmp.gt.s32.totalorder %v1210_v6, 0 }
 0x1a0   : > { %v2684_v43 = vpop.eup %2683  ;;  %v1572_v42 = vadd.s32 %v1571_v15, %v1567_v5  ;;  %v1212_v63 = vsel %vm1211_vm11, %v1210_v6, 0  ;;  %v1207_v4 = vand.u32 8388607, %v1200_v9  ;;  %vm1819_vm12 = vcmp.eq.s32.totalorder %v1814_v35, 2 }
 0x1a1   : > { %v2686_v11 = vpop.eup %2685  ;;  %v1820_v41 = vxor.u32 2147483648, %v2684_v43  ;;  %v759_v17 = vor.u32 4788187, %v758_v25  ;;  %v1214_v36 = vand.u32 31, %v1212_v63  ;;  %vm1816_vm13 = vcmp.eq.s32.totalorder %v1814_v35, 0 }
 0x1a2   : > { %v1817_v32 = vxor.u32 2147483648, %v2686_v11  ;;  %v1573_v34 = vadd.s32 536870912, %v1572_v42  ;;  %v762_v31 = vcvt.s32.f32 %v755_v29  ;;  %vm1815_vm14 = vcmp.lt.s32.totalorder %v1814_v35, 2 }
 0x1a3   : > { %v1821_v57 = vsel %vm1819_vm12, %v1820_v41, %v2686_v11  ;;  %v760_v21 = vand.u32 2147483647, %v759_v17  ;;  %v1215_v26 = vsub.s32 32, %v1214_v36  ;;  %v3515_v24 = vand.u32 3, %v773_v60 }
 0x1a4   : > { %v1818_v18 = vsel %vm1816_vm13, %v2684_v43, %v1817_v32  ;;  %v3513_v51 = vshrl.u32 %v1573_v34, 30  ;;  %v1208_v30 = vor.u32 8388608, %v1207_v4  ;;  %v1217_v12 = vshll.u32 %v2807_v48, %v1214_v36 }
 0x1a5   : > { %v1822_v8 = vsel %vm1815_vm14, %v1818_v18, %v1821_v57  ;;  %v763_v28 = vmul.f32 %v762_v31, %v760_v21  ;;  %v3522_v46 = vadd.f32 %v3377_v22, %v2514_v23  ;;  %v1218_v39 = vshrl.u32 %v2808_v52, %v1215_v26 }
 0x1a6   : > { %v1823_v13 = vsel %vm1812_vm10, nan, %v1822_v8  ;;  %v1575_v37 = vshll.u32 %v3513_v51, 30  ;;  %v1221_v19 = vshrl.u32 %v2809_v54, %v1215_v26  ;;  %v1224_v16 = vshrl.u32 %v2810_v56, %v1215_v26 }
 0x1a7   : > { %2251 = vst [vmem:[%s3224_s26 + $0x58] sm:$0xff] %v1823_v13  ;;  %v764_v27 = vxor.u32 2147483648, %v763_v28  ;;  %v1220_v14 = vshll.u32 %v2808_v52, %v1214_v36  ;;  %v1223_v44 = vshll.u32 %v2809_v54, %v1214_v36  ;;  %v1227_v55 = vshrl.u32 %v2811_v58, %v1215_v26 }
 0x1a8   : > { %v3528_v3 = vsub.s32 %v1572_v42, %v1575_v37  ;;  %v1213_v2 = vshrl.u32 %v1212_v63, 5  ;;  %v1219_v59 = vor.u32 %v1218_v39, %v1217_v12  ;;  %v1226_v40 = vshll.u32 %v2810_v56, %v1214_v36 }
 0x1a9   : > { %v765_v47 = vsel %vm682_vm2, %v764_v27, %v763_v28  ;;  %v1222_v33 = vor.u32 %v1221_v19, %v1220_v14  ;;  %v1225_v62 = vor.u32 %v1224_v16, %v1223_v44  ;;  %v1229_v35 = vshll.u32 %v2811_v58, %v1214_v36 }
 0x1aa   : > { %v768_v49 = vsel %vm3495_vm8, %v3308_v38, %v765_v47  ;;  %v1578_v61 = vsub.s32 0, %v3528_v3  ;;  %v1228_v6 = vor.u32 %v1227_v55, %v1226_v40  ;;  %v1230_v10 = vshrl.u32 %v2812_v1, %v1215_v26 }
 0x1ab   : > { %2687 = vcosq.f32 %v768_v49  ;;  %v1248_v29 = vshll.u32 %v1208_v30, 8  ;;  %v2035_v25 = vand.u32 2139095040, %v3522_v46  ;;  %v1216_v15 = vshrl.u32 %v2807_v48, %v1215_v26 }
 0x1ac   : > { %2689 = vsinq.f32 %v768_v49  ;;  %v2447_v5 = vmin.u32 %v1578_v61, %v3528_v3  ;;  %v1231_v7 = vor.u32 %v1230_v10, %v1229_v35  ;;  %vm1232_vm15 = vcmp.lt.s32.totalorder %v1213_v2, 1 }
 0x1ad   : > { %vm1233_vm0 = vcmp.lt.s32.totalorder %v1213_v2, 2  ;;  %vm1234_vm1 = vcmp.lt.s32.totalorder %v1213_v2, 3  ;;  %vm1235_vm2 = vcmp.lt.s32.totalorder %v1213_v2, 4  ;;  %v1240_v42 = vsel %vm1232_vm15, %v1219_v59, %v1222_v33 }
 0x1ae   : > { %v1580_v43 = vclz %v2447_v5  ;;  %v1237_v63 = vsel %vm1235_vm2, %v1225_v62, 2102212464  ;;  %v1241_v11 = vsel %vm1235_vm2, %v1228_v6, 920167782  ;;  %v1244_v41 = vsel %vm1232_vm15, %v1222_v33, %v1225_v62 }
 0x1af   : > { %v1245_v17 = vsel %vm1235_vm2, %v1231_v7, 1326507024  ;;  %v1598_v4 = vsub.s32 4, %v3513_v51  ;;  %v1242_v32 = vsel %vm1234_vm1, %v1225_v62, %v1241_v11  ;;  %v1236_v36 = vsel %vm1232_vm15, %v1216_v15, %v1219_v59 }
 0x1b0   : > { %v2448_v60 = vadd.s32 4294967294, %v1580_v43  ;;  %v1246_v34 = vsel %vm1234_vm1, %v1228_v6, %v1245_v17  ;;  %v1243_v57 = vsel %vm1233_vm0, %v1240_v42, %v1242_v32  ;;  %v2036_v31 = vshrl.u32 %v2035_v25, 23 }
 0x1b1   : > { %v1247_v21 = vsel %vm1233_vm0, %v1244_v41, %v1246_v34  ;;  %v1238_v23 = vsel %vm1234_vm1, %v1222_v33, %v1237_v63  ;;  %v3554_v28 = vmul.u32.u64.low %v1248_v29, %v1243_v57  ;;  %v3555_v30 = vmul.u32.u64.high %v1248_v29, %v1243_v57, %v3554_v28 }
 0x1b2   : > { %vm2449_vm3 = vcmp.lt.s32.totalorder %v2448_v60, 0  ;;  %v3551_v18 = vmul.u32.u64.low %v1248_v29, %v1247_v21  ;;  %v3552_v26 = vmul.u32.u64.high %v1248_v29, %v1247_v21, %v3551_v18  ;;  %v2466_v13 = vadd.s32 4294967169, %v2036_v31 }
 0x1b3   : > { %v1583_v8 = vsel %vm2449_vm3, 0, %v2448_v60  ;;  %vm3560_vm4 = vcmp.le.f32.partialorder %v1512_v45, 0.7853982  ;;  %v1568_v12 = vadd.s32 %v3482_v20, %v3490_v0  ;;  %vm772_vm5 = vweird.f32 %v3308_v38 }
 0x1b4   : > { %v1584_v27 = vsub.s32 32, %v1583_v8  ;;  %v1588_v39 = vsub.s32 4294967266, %v1583_v8  ;;  %vm775_vm6 = vcmp.lt.s32.totalorder %v3515_v24, 2  ;;  %vm1514_vm7 = vcmp.lt.s32.totalorder %v3380_v50, 0 }
 0x1b5   : > { %v1239_v19 = vsel %vm1233_vm0, %v1236_v36, %v1238_v23  ;;  %v2042_v16 = vadd.s32 1, %v2466_v13  ;;  %v1585_v14 = vshll.u32 %v3528_v3, %v1583_v8  ;;  %vm1257_vm8 = vc.u32 %v3552_v26, %v3554_v28  ;;  %v415_v3 = vpop.f32.mrf.mxu0 }
 0x1b6   : > { %v1586_v45 = vshrl.u32 %v1568_v12, %v1584_v27  ;;  %v1589_v44 = vadd.s32 127, %v1588_v39  ;;  %vm776_vm9 = vcmp.eq.s32.totalorder %v3515_v24, 0  ;;  %v1599_v20 = vsel %vm1514_vm7, %v1598_v4, %v3513_v51 }
 0x1b7   : > { %v1258_v0 = vadd.s32 1, %v3555_v30  ;;  %vm2043_vm11 = vcmp.gt.s32.totalorder %v2042_v16, 0  ;;  %v1255_v59 = vmul.u32 %v1248_v29, %v1239_v19  ;;  %v2032_v62 = vand.u32 2147483647, %v3522_v46 }
 0x1b8   : > { %v2688_v55 = vpop.eup %2687  ;;  %v1587_v47 = vor.u32 %v1586_v45, %v1585_v14  ;;  %v1590_v2 = vshll.u32 %v1589_v44, 23  ;;  %v2044_v40 = vsel %vm2043_vm11, %v2042_v16, 0  ;;  %vm779_vm10 = vcmp.eq.s32.totalorder %v3515_v24, 2 }
 0x1b9   : > { %v2690_v49 = vpop.eup %2689  ;;  %v780_v61 = vxor.u32 2147483648, %v2688_v55  ;;  %v1259_v33 = vsel %vm1257_vm8, %v1258_v0, %v3555_v30  ;;  %v2046_v6 = vand.u32 31, %v2044_v40  ;;  %v1601_v25 = vsel %vm3560_vm4, 0, %v1599_v20 }
 0x1ba   : > { %v777_v35 = vxor.u32 2147483648, %v2690_v49  ;;  %v1591_v51 = vor.u32 4788187, %v1590_v2  ;;  %v1260_v10 = vadd.s32 %v1259_v33, %v1255_v59  ;;  %v3584_v15 = vadd.f32 %v3377_v22, %v415_v3 }
 0x1bb   : > { %v781_v5 = vsel %vm779_vm10, %v780_v61, %v2690_v49  ;;  %v2047_v29 = vsub.s32 32, %v2046_v6  ;;  %v1594_v42 = vcvt.s32.f32 %v1587_v47  ;;  %v2039_v41 = vand.u32 8388607, %v2032_v62 }
 0x1bc   : > { %v778_v7 = vsel %vm776_vm9, %v2688_v55, %v777_v35  ;;  %v1592_v43 = vand.u32 2147483647, %v1591_v51  ;;  %v1261_v63 = vadd.s32 536870912, %v1260_v10  ;;  %v2045_v57 = vshrl.u32 %v2044_v40, 5 }
 0x1bd   : > { %v782_v11 = vsel %vm775_vm6, %v778_v7, %v781_v5  ;;  %v2050_v17 = vshrl.u32 %v2808_v52, %v2047_v29  ;;  %v2053_v60 = vshrl.u32 %v2809_v54, %v2047_v29  ;;  %v2056_v36 = vshrl.u32 %v2810_v56, %v2047_v29 }
 0x1be   : > { %v783_v4 = vsel %vm772_vm5, nan, %v782_v11  ;;  %v1595_v32 = vmul.f32 %v1594_v42, %v1592_v43  ;;  %v1262_v34 = vshrl.u32 %v1261_v63, 30  ;;  %v2049_v21 = vshll.u32 %v2807_v48, %v2046_v6 }
 0x1bf   : > { %2241 = vst [vmem:[%s3224_s26 + $0x8] sm:$0xff] %v783_v4  ;;  %v2055_v24 = vshll.u32 %v2809_v54, %v2046_v6  ;;  %v2059_v31 = vshrl.u32 %v2811_v58, %v2047_v29  ;;  %v2052_v8 = vshll.u32 %v2808_v52, %v2046_v6  ;;  %v2058_v30 = vshll.u32 %v2810_v56, %v2046_v6 }
 0x1c0   : > { %v1596_v23 = vxor.u32 2147483648, %v1595_v32  ;;  %v1263_v18 = vshll.u32 %v1262_v34, 30  ;;  %v2051_v38 = vor.u32 %v2050_v17, %v2049_v21  ;;  %v2061_v12 = vshll.u32 %v2811_v58, %v2046_v6 }
 0x1c1   : > { %v2057_v13 = vor.u32 %v2056_v36, %v2055_v24  ;;  %v2062_v27 = vshrl.u32 %v2812_v1, %v2047_v29  ;;  %v2054_v16 = vor.u32 %v2053_v60, %v2052_v8  ;;  %v2060_v14 = vor.u32 %v2059_v31, %v2058_v30 }
 0x1c2   : > { %v1597_v39 = vsel %vm1514_vm7, %v1596_v23, %v1595_v32  ;;  %v3607_v19 = vsub.s32 %v1260_v10, %v1263_v18  ;;  %v1605_v44 = vadd.s32 3, %v1601_v25  ;;  %v2040_v20 = vor.u32 8388608, %v2039_v41 }
 0x1c3   : > { %v1600_v45 = vsel %vm3560_vm4, %v3380_v50, %v1597_v39  ;;  %v2063_v0 = vor.u32 %v2062_v27, %v2061_v12  ;;  %vm2067_vm12 = vcmp.lt.s32.totalorder %v2045_v57, 4  ;;  %v995_v47 = vand.u32 2139095040, %v3584_v15 }
 0x1c4   : > { %2691 = vcosq.f32 %v1600_v45  ;;  %v1266_v55 = vsub.s32 0, %v3607_v19  ;;  %v2048_v2 = vshrl.u32 %v2807_v48, %v2047_v29  ;;  %vm2064_vm13 = vcmp.lt.s32.totalorder %v2045_v57, 1 }
 0x1c5   : > { %2693 = vsinq.f32 %v1600_v45  ;;  %v2069_v59 = vsel %vm2067_vm12, %v2057_v13, 2102212464  ;;  %vm2066_vm14 = vcmp.lt.s32.totalorder %v2045_v57, 3  ;;  %v2072_v3 = vsel %vm2064_vm13, %v2051_v38, %v2054_v16 }
 0x1c6   : > { %v2435_v40 = vmin.u32 %v1266_v55, %v3607_v19  ;;  %v2073_v37 = vsel %vm2067_vm12, %v2060_v14, 920167782  ;;  %v1286_v49 = vsub.s32 4, %v1262_v34  ;;  %v2076_v33 = vsel %vm2064_vm13, %v2054_v16, %v2057_v13 }
 0x1c7   : > { %v2074_v61 = vsel %vm2066_vm14, %v2057_v13, %v2073_v37  ;;  %v2077_v6 = vsel %vm2067_vm12, %v2063_v0, 1326507024  ;;  %vm2065_vm15 = vcmp.lt.s32.totalorder %v2045_v57, 2  ;;  %v2068_v51 = vsel %vm2064_vm13, %v2048_v2, %v2051_v38 }
 0x1c8   : > { %v1268_v35 = vclz %v2435_v40  ;;  %v2070_v10 = vsel %vm2066_vm14, %v2054_v16, %v2069_v59  ;;  %v2075_v5 = vsel %vm2065_vm15, %v2072_v3, %v2074_v61  ;;  %v2078_v25 = vsel %vm2066_vm14, %v2060_v14, %v2077_v6  ;;  %v447_v6 = vpop.f32.mrf.mxu1 }
 0x1c9   : > { %v2080_v7 = vshll.u32 %v2040_v20, 8  ;;  %v996_v43 = vshrl.u32 %v995_v47, 23  ;;  %vm1202_vm0 = vcmp.lt.s32.totalorder %v3450_v53, 0  ;;  %v2079_v42 = vsel %vm2065_vm15, %v2076_v33, %v2078_v25 }
 0x1ca   : > { %v2436_v29 = vadd.s32 4294967294, %v1268_v35  ;;  %v1287_v60 = vsel %vm1202_vm0, %v1286_v49, %v1262_v34  ;;  %v2071_v4 = vsel %vm2065_vm15, %v2068_v51, %v2070_v10  ;;  %v1606_v36 = vand.u32 3, %v1605_v44 }
 0x1cb   : > { %v3617_v63 = vmul.u32.u64.low %v2080_v7, %v2079_v42  ;;  %v3618_v11 = vmul.u32.u64.high %v2080_v7, %v2079_v42, %v3617_v63  ;;  %v3620_v41 = vmul.u32.u64.low %v2080_v7, %v2075_v5  ;;  %v3621_v17 = vmul.u32.u64.high %v2080_v7, %v2075_v5, %v3620_v41 }
 0x1cc   : > { %vm2437_vm1 = vcmp.lt.s32.totalorder %v2436_v29, 0  ;;  %v2426_v32 = vadd.s32 4294967169, %v996_v43  ;;  %vm3628_vm2 = vcmp.le.f32.partialorder %v1200_v9, 0.7853982  ;;  %v992_v24 = vand.u32 2147483647, %v3584_v15 }
 0x1cd   : > { %v1271_v21 = vsel %vm2437_vm1, 0, %v2436_v29  ;;  %v1256_v31 = vadd.s32 %v3554_v28, %v3552_v26  ;;  %v1289_v34 = vsel %vm3628_vm2, 0, %v1287_v60  ;;  %v2087_v30 = vmul.u32 %v2080_v7, %v2071_v4 }
 0x1ce   : > { %v1272_v23 = vsub.s32 32, %v1271_v21  ;;  %v1276_v18 = vsub.s32 4294967266, %v1271_v21  ;;  %v1002_v8 = vadd.s32 1, %v2426_v32  ;;  %vm2089_vm3 = vc.u32 %v3618_v11, %v3620_v41 }
 0x1cf   : > { %v2090_v9 = vadd.s32 1, %v3621_v17  ;;  %v1273_v38 = vshll.u32 %v3607_v19, %v1271_v21  ;;  %vm1611_vm5 = vcmp.eq.s32.totalorder %v1606_v36, 2  ;;  %v1293_v0 = vadd.s32 3, %v1289_v34 }
 0x1d0   : > { %v1274_v13 = vshrl.u32 %v1256_v31, %v1272_v23  ;;  %v1277_v12 = vadd.s32 127, %v1276_v18  ;;  %vm1003_vm4 = vcmp.gt.s32.totalorder %v1002_v8, 0  ;;  %v999_v55 = vand.u32 8388607, %v992_v24 }
 0x1d1   : > { %v2692_v27 = vpop.eup %2691  ;;  %v2091_v26 = vsel %vm2089_vm3, %v2090_v9, %v3621_v17  ;;  %v1004_v28 = vsel %vm1003_vm4, %v1002_v8, 0  ;;  %vm1608_vm6 = vcmp.eq.s32.totalorder %v1606_v36, 0  ;;  %vm1604_vm7 = vweird.f32 %v3380_v50 }
 0x1d2   : > { %v2694_v39 = vpop.eup %2693  ;;  %v1612_v16 = vxor.u32 2147483648, %v2692_v27  ;;  %v1275_v14 = vor.u32 %v1274_v13, %v1273_v38  ;;  %v1278_v45 = vshll.u32 %v1277_v12, 23  ;;  %v2092_v44 = vadd.s32 %v2091_v26, %v2087_v30 }
 0x1d3   : > { %v1609_v20 = vxor.u32 2147483648, %v2694_v39  ;;  %v1006_v47 = vand.u32 31, %v1004_v28  ;;  %vm1607_vm8 = vcmp.lt.s32.totalorder %v1606_v36, 2  ;;  %v3647_v51 = vand.u32 3, %v1293_v0 }
 0x1d4   : > { %v1613_v19 = vsel %vm1611_vm5, %v1612_v16, %v2694_v39  ;;  %v1279_v2 = vor.u32 4788187, %v1278_v45  ;;  %v2093_v59 = vadd.s32 536870912, %v2092_v44  ;;  %v1282_v61 = vcvt.s32.f32 %v1275_v14 }
 0x1d5   : > { %v1610_v40 = vsel %vm1608_vm6, %v2692_v27, %v1609_v20  ;;  %v1007_v3 = vsub.s32 32, %v1006_v47  ;;  %v1000_v10 = vor.u32 8388608, %v999_v55  ;;  %v1005_v43 = vshrl.u32 %v1004_v28, 5 }
 0x1d6   : > { %v1614_v37 = vsel %vm1607_vm8, %v1610_v40, %v1613_v19  ;;  %v1280_v49 = vand.u32 2147483647, %v1279_v2  ;;  %v3645_v33 = vshrl.u32 %v2093_v59, 30  ;;  %v3656_v63 = vadd.f32 %v3377_v22, %v447_v6 }
 0x1d7   : > { %v1615_v35 = vsel %vm1604_vm7, nan, %v1614_v37  ;;  %v1010_v7 = vshrl.u32 %v2808_v52, %v1007_v3  ;;  %v1013_v50 = vshrl.u32 %v2809_v54, %v1007_v3  ;;  %v1016_v29 = vshrl.u32 %v2810_v56, %v1007_v3 }
 0x1d8   : > { %2249 = vst [vmem:[%s3224_s26 + $0x48] sm:$0xff] %v1615_v35  ;;  %v1283_v5 = vmul.f32 %v1282_v61, %v1280_v49  ;;  %v2095_v25 = vshll.u32 %v3645_v33, 30  ;;  %v1019_v42 = vshrl.u32 %v2811_v58, %v1007_v3  ;;  %v1009_v4 = vshll.u32 %v2807_v48, %v1006_v47 }
 0x1d9   : > { %v1012_v32 = vshll.u32 %v2808_v52, %v1006_v47  ;;  %v1015_v36 = vshll.u32 %v2809_v54, %v1006_v47  ;;  %v1018_v21 = vshll.u32 %v2810_v56, %v1006_v47  ;;  %v1021_v31 = vshll.u32 %v2811_v58, %v1006_v47 }
 0x1da   : > { %v1284_v17 = vxor.u32 2147483648, %v1283_v5  ;;  %v3658_v60 = vsub.s32 %v2092_v44, %v2095_v25  ;;  %v1022_v23 = vshrl.u32 %v2812_v1, %v1007_v3  ;;  %v1011_v8 = vor.u32 %v1010_v7, %v1009_v4 }
 0x1db   : > { %v1014_v34 = vor.u32 %v1013_v50, %v1012_v32  ;;  %vm2034_vm9 = vcmp.lt.s32.totalorder %v3522_v46, 0  ;;  %v1017_v9 = vor.u32 %v1016_v29, %v1015_v36  ;;  %v1020_v38 = vor.u32 %v1019_v42, %v1018_v21 }
 0x1dc   : > { %v1285_v18 = vsel %vm1202_vm0, %v1284_v17, %v1283_v5  ;;  %v2098_v22 = vsub.s32 0, %v3658_v60  ;;  %v1023_v13 = vor.u32 %v1022_v23, %v1021_v31  ;;  %v1040_v27 = vshll.u32 %v1000_v10, 8 }
 0x1dd   : > { %v1288_v30 = vsel %vm3628_vm2, %v3450_v53, %v1285_v18  ;;  %v1827_v26 = vand.u32 2139095040, %v3656_v63  ;;  %v2118_v28 = vsub.s32 4, %v3645_v33  ;;  %v1008_v39 = vshrl.u32 %v2807_v48, %v1007_v3 }
 0x1de   : > { %2695 = vcosq.f32 %v1288_v30  ;;  %v2467_v12 = vmin.u32 %v2098_v22, %v3658_v60  ;;  %vm1024_vm11 = vcmp.lt.s32.totalorder %v1005_v43, 1  ;;  %vm1026_vm10 = vcmp.lt.s32.totalorder %v1005_v43, 3 }
 0x1df   : > { %2697 = vsinq.f32 %v1288_v30  ;;  %vm1027_vm12 = vcmp.lt.s32.totalorder %v1005_v43, 4  ;;  %v1032_v57 = vsel %vm1024_vm11, %v1011_v8, %v1014_v34  ;;  %v1036_v44 = vsel %vm1024_vm11, %v1014_v34, %v1017_v9 }
 0x1e0   : > { %v2100_v16 = vclz %v2467_v12  ;;  %v1029_v14 = vsel %vm1027_vm12, %v1017_v9, 2102212464  ;;  %v1033_v45 = vsel %vm1027_vm12, %v1020_v38, 920167782  ;;  %v1037_v20 = vsel %vm1027_vm12, %v1023_v13, 1326507024 }
 0x1e1   : > { %vm1025_vm13 = vcmp.lt.s32.totalorder %v1005_v43, 2  ;;  %v1034_v55 = vsel %vm1026_vm10, %v1017_v9, %v1033_v45  ;;  %v1038_v47 = vsel %vm1026_vm10, %v1020_v38, %v1037_v20  ;;  %v1028_v19 = vsel %vm1024_vm11, %v1008_v39, %v1011_v8  ;;  %v2507_v43 = vpop.f32.mrf.mxu0  ;;  %v3716_v38 = vld [vmem:[%s4117_s2] ss:$0 sm:$0xff] }
 0x1e2   : > { %v2468_v0 = vadd.s32 4294967294, %v2100_v16  ;;  %v1035_v2 = vsel %vm1025_vm13, %v1032_v57, %v1034_v55  ;;  %v1039_v59 = vsel %vm1025_vm13, %v1036_v44, %v1038_v47  ;;  %v1828_v40 = vshrl.u32 %v1827_v26, 23 }
 0x1e3   : > { %v1030_v3 = vsel %vm1026_vm10, %v1014_v34, %v1029_v14  ;;  %v3682_v37 = vmul.u32.u64.low %v1040_v27, %v1039_v59  ;;  %v3683_v49 = vmul.u32.u64.high %v1040_v27, %v1039_v59, %v3682_v37  ;;  %v2088_v5 = vadd.s32 %v3620_v41, %v3618_v11 }
 0x1e4   : > { %vm2469_vm14 = vcmp.lt.s32.totalorder %v2468_v0, 0  ;;  %v3685_v6 = vmul.u32.u64.low %v1040_v27, %v1035_v2  ;;  %v3686_v35 = vmul.u32.u64.high %v1040_v27, %v1035_v2, %v3685_v6  ;;  %v2458_v10 = vadd.s32 4294967169, %v1828_v40 }
 0x1e5   : > { %v2103_v61 = vsel %vm2469_vm14, 0, %v2468_v0  ;;  %v2119_v50 = vsel %vm2034_vm9, %v2118_v28, %v3645_v33  ;;  %vm1295_vm15 = vcmp.lt.s32.totalorder %v3647_v51, 2  ;;  %vm3697_vm0 = vcmp.le.f32.partialorder %v2032_v62, 0.7853982 }
 0x1e6   : > { %v2104_v25 = vsub.s32 32, %v2103_v61  ;;  %v2108_v7 = vsub.s32 4294967266, %v2103_v61  ;;  %v1031_v42 = vsel %vm1025_vm13, %v1028_v19, %v1030_v3  ;;  %v1834_v17 = vadd.s32 1, %v2458_v10 }
 0x1e7   : > { %vm1292_vm1 = vweird.f32 %v3450_v53  ;;  %v2105_v11 = vshll.u32 %v3658_v60, %v2103_v61  ;;  %vm1049_vm2 = vc.u32 %v3683_v49, %v3685_v6  ;;  %v2121_v33 = vsel %vm3697_vm0, 0, %v2119_v50 }
 0x1e8   : > { %v2106_v41 = vshrl.u32 %v2088_v5, %v2104_v25  ;;  %v2109_v4 = vadd.s32 127, %v2108_v7  ;;  %v1050_v62 = vadd.s32 1, %v3686_v35  ;;  %v1824_v32 = vand.u32 2147483647, %v3656_v63 }
 0x1e9   : > { %vm1835_vm3 = vcmp.gt.s32.totalorder %v1834_v17, 0  ;;  %v1047_v31 = vmul.u32 %v1040_v27, %v1031_v42  ;;  %vm1296_vm4 = vcmp.eq.s32.totalorder %v3647_v51, 0  ;;  %vm1299_vm5 = vcmp.eq.s32.totalorder %v3647_v51, 2 }
 0x1ea   : > { %v2107_v36 = vor.u32 %v2106_v41, %v2105_v11  ;;  %v2110_v21 = vshll.u32 %v2109_v4, 23  ;;  %v1836_v23 = vsel %vm1835_vm3, %v1834_v17, 0  ;;  %v1051_v60 = vsel %vm1049_vm2, %v1050_v62, %v3686_v35 }
 0x1eb   : > { %v2696_v18 = vpop.eup %2695  ;;  %v1838_v22 = vand.u32 31, %v1836_v23  ;;  %v1052_v9 = vadd.s32 %v1051_v60, %v1047_v31  ;;  %v3719_v13 = vadd.f32 %v3716_v38, %v2507_v43  ;;  %v3721_v27 = vadd.s32 3, %v2121_v33 }
 0x1ec   : > { %v2698_v8 = vpop.eup %2697  ;;  %v1300_v34 = vxor.u32 2147483648, %v2696_v18  ;;  %v2111_v30 = vor.u32 4788187, %v2110_v21  ;;  %v1831_v26 = vand.u32 8388607, %v1824_v32  ;;  %v2114_v57 = vcvt.s32.f32 %v2107_v36 }
 0x1ed   : > { %v1297_v12 = vxor.u32 2147483648, %v2698_v8  ;;  %v1839_v28 = vsub.s32 32, %v1838_v22  ;;  %v1053_v14 = vadd.s32 536870912, %v1052_v9  ;;  %v1841_v44 = vshll.u32 %v2807_v48, %v1838_v22 }
 0x1ee   : > { %v1301_v39 = vsel %vm1299_vm5, %v1300_v34, %v2698_v8  ;;  %v2112_v16 = vand.u32 2147483647, %v2111_v30  ;;  %v1832_v40 = vor.u32 8388608, %v1831_v26  ;;  %v1837_v3 = vshrl.u32 %v1836_v23, 5 }
 0x1ef   : > { %v1298_v45 = vsel %vm1296_vm4, %v2696_v18, %v1297_v12  ;;  %v1842_v20 = vshrl.u32 %v2808_v52, %v1839_v28  ;;  %v1845_v0 = vshrl.u32 %v2809_v54, %v1839_v28  ;;  %v3732_v19 = vshrl.u32 %v1053_v14, 30 }
 0x1f0   : > { %v1302_v55 = vsel %vm1295_vm15, %v1298_v45, %v1301_v39  ;;  %v2115_v47 = vmul.f32 %v2114_v57, %v2112_v16  ;;  %v1848_v2 = vshrl.u32 %v2810_v56, %v1839_v28  ;;  %v1844_v37 = vshll.u32 %v2808_v52, %v1838_v22  ;;  %v2515_v57 = vpop.f32.mrf.mxu1 }
 0x1f1   : > { %v1303_v59 = vsel %vm1292_vm1, nan, %v1302_v55  ;;  %v1055_v35 = vshll.u32 %v3732_v19, 30  ;;  %v1843_v10 = vor.u32 %v1842_v20, %v1841_v44  ;;  %v1847_v51 = vshll.u32 %v2809_v54, %v1838_v22 }
 0x1f2   : > { %2246 = vst [vmem:[%s3224_s26 + $0x30] sm:$0xff] %v1303_v59  ;;  %v2116_v61 = vxor.u32 2147483648, %v2115_v47  ;;  %v1850_v5 = vshll.u32 %v2810_v56, %v1838_v22  ;;  %v1851_v25 = vshrl.u32 %v2811_v58, %v1839_v28  ;;  %v1853_v7 = vshll.u32 %v2811_v58, %v1838_v22 }
 0x1f3   : > { %v1854_v53 = vshrl.u32 %v2812_v1, %v1839_v28  ;;  %v3747_v42 = vsub.s32 %v1052_v9, %v1055_v35  ;;  %v1846_v17 = vor.u32 %v1845_v0, %v1844_v37  ;;  %v1849_v11 = vor.u32 %v1848_v2, %v1847_v51 }
 0x1f4   : > { %v2117_v50 = vsel %vm2034_vm9, %v2116_v61, %v2115_v47  ;;  %v1852_v4 = vor.u32 %v1851_v25, %v1850_v5  ;;  %v1304_v62 = vand.u32 2147483647, %v3719_v13  ;;  %v1840_v36 = vshrl.u32 %v2807_v48, %v1839_v28 }
 0x1f5   : > { %v2120_v41 = vsel %vm3697_vm0, %v3522_v46, %v2117_v50  ;;  %v1855_v33 = vor.u32 %v1854_v53, %v1853_v7  ;;  %v1058_v43 = vsub.s32 0, %v3747_v42  ;;  %v1307_v21 = vand.u32 2139095040, %v3719_v13 }
 0x1f6   : > { %2699 = vcosq.f32 %v2120_v41  ;;  %vm994_vm6 = vcmp.lt.s32.totalorder %v3584_v15, 0  ;;  %vm1856_vm7 = vcmp.lt.s32.totalorder %v1837_v3, 1  ;;  %vm1858_vm8 = vcmp.lt.s32.totalorder %v1837_v3, 3 }
 0x1f7   : > { %2701 = vsinq.f32 %v2120_v41  ;;  %vm1859_vm9 = vcmp.lt.s32.totalorder %v1837_v3, 4  ;;  %v2427_v29 = vmin.u32 %v1058_v43, %v3747_v42  ;;  %v1864_v23 = vsel %vm1856_vm7, %v1843_v10, %v1846_v17 }
 0x1f8   : > { %v1861_v31 = vsel %vm1859_vm9, %v1849_v11, 2102212464  ;;  %v1865_v18 = vsel %vm1859_vm9, %v1852_v4, 920167782  ;;  %v1868_v22 = vsel %vm1856_vm7, %v1846_v17, %v1849_v11  ;;  %v1869_v8 = vsel %vm1859_vm9, %v1855_v33, 1326507024 }
 0x1f9   : > { %v1866_v60 = vsel %vm1858_vm8, %v1849_v11, %v1865_v18  ;;  %v1872_v34 = vshll.u32 %v1832_v40, 8  ;;  %v1060_v30 = vclz %v2427_v29  ;;  %v1078_v9 = vsub.s32 4, %v3732_v19 }
 0x1fa   : > { %vm1857_vm11 = vcmp.lt.s32.totalorder %v1837_v3, 2  ;;  %v1860_v12 = vsel %vm1856_vm7, %v1840_v36, %v1843_v10  ;;  %v1862_v26 = vsel %vm1858_vm8, %v1846_v17, %v1861_v31  ;;  %v1870_v39 = vsel %vm1858_vm8, %v1852_v4, %v1869_v8 }
 0x1fb   : > { %v1867_v28 = vsel %vm1857_vm11, %v1864_v23, %v1866_v60  ;;  %v1308_v16 = vshrl.u32 %v1307_v21, 23  ;;  %v2428_v14 = vadd.s32 4294967294, %v1060_v30  ;;  %v1871_v45 = vsel %vm1857_vm11, %v1868_v22, %v1870_v39 }
 0x1fc   : > { %v3762_v44 = vmul.u32.u64.low %v1872_v34, %v1867_v28  ;;  %v3763_v20 = vmul.u32.u64.high %v1872_v34, %v1867_v28, %v3762_v44  ;;  %vm3767_vm10 = vcmp.le.f32.partialorder %v992_v24, 0.7853982  ;;  %v2126_v59 = vand.u32 3, %v3721_v27 }
 0x1fd   : > { %v3771_v55 = vmul.u32.u64.low %v1872_v34, %v1871_v45  ;;  %v3772_v47 = vmul.u32.u64.high %v1872_v34, %v1871_v45, %v3771_v55  ;;  %v2438_v2 = vadd.s32 4294967169, %v1308_v16  ;;  %vm2429_vm12 = vcmp.lt.s32.totalorder %v2428_v14, 0 }
 0x1fe   : > { %v1863_v40 = vsel %vm1857_vm11, %v1860_v12, %v1862_v26  ;;  %v3776_v3 = vadd.f32 %v3716_v38, %v2515_v57  ;;  %v1048_v37 = vadd.s32 %v3685_v6, %v3683_v49  ;;  %v1063_v61 = vsel %vm2429_vm12, 0, %v2428_v14 }
 0x1ff   : > { %v3782_v24 = vand.u32 8388607, %v1304_v62  ;;  %v1314_v35 = vadd.s32 1, %v2438_v2  ;;  %vm2124_vm13 = vweird.f32 %v3522_v46  ;;  %v1064_v10 = vsub.s32 32, %v1063_v61 }
 0x200   : > { %v1068_v51 = vsub.s32 4294967266, %v1063_v61  ;;  %v1079_v27 = vsel %vm994_vm6, %v1078_v9, %v3732_v19  ;;  %v1882_v5 = vadd.s32 1, %v3763_v20  ;;  %v1065_v25 = vshll.u32 %v3747_v42, %v1063_v61 }
 0x201   : > { %v1879_v7 = vmul.u32 %v1872_v34, %v1863_v40  ;;  %vm1881_vm14 = vc.u32 %v3772_v47, %v3762_v44  ;;  %vm1315_vm15 = vcmp.gt.s32.totalorder %v1314_v35, 0  ;;  %v1066_v49 = vshrl.u32 %v1048_v37, %v1064_v10 }
 0x202   : > { %v1069_v6 = vadd.s32 127, %v1068_v51  ;;  %v1883_v53 = vsel %vm1881_vm14, %v1882_v5, %v3763_v20  ;;  %v1316_v50 = vsel %vm1315_vm15, %v1314_v35, 0  ;;  %vm2127_vm0 = vcmp.lt.s32.totalorder %v2126_v59, 2 }
 0x203   : > { %v2700_v17 = vpop.eup %2699  ;;  %v1081_v11 = vsel %vm3767_vm10, 0, %v1079_v27  ;;  %v1884_v41 = vadd.s32 %v1883_v53, %v1879_v7  ;;  %v1318_v19 = vand.u32 31, %v1316_v50  ;;  %vm2128_vm1 = vcmp.eq.s32.totalorder %v2126_v59, 0 }
 0x204   : > { %v2702_v4 = vpop.eup %2701  ;;  %v2132_v33 = vxor.u32 2147483648, %v2700_v17  ;;  %v1067_v42 = vor.u32 %v1066_v49, %v1065_v25  ;;  %v1070_v43 = vshll.u32 %v1069_v6, 23  ;;  %vm2131_vm2 = vcmp.eq.s32.totalorder %v2126_v59, 2 }
 0x205   : > { %v2129_v36 = vxor.u32 2147483648, %v2702_v4  ;;  %v1885_v21 = vadd.s32 536870912, %v1884_v41  ;;  %v1319_v29 = vsub.s32 32, %v1318_v19  ;;  %v3794_v18 = vadd.s32 3, %v1081_v11 }
 0x206   : > { %v2133_v31 = vsel %vm2131_vm2, %v2132_v33, %v2702_v4  ;;  %v1071_v23 = vor.u32 4788187, %v1070_v43  ;;  %v1312_v60 = vor.u32 8388608, %v3782_v24  ;;  %v2136_v34 = vand.u32 2147483647, %v3776_v3 }
 0x207   : > { %v2130_v22 = vsel %vm2128_vm1, %v2700_v17, %v2129_v36  ;;  %v1886_v8 = vshrl.u32 %v1885_v21, 30  ;;  %v2139_v30 = vand.u32 2139095040, %v3776_v3  ;;  %v1074_v26 = vcvt.s32.f32 %v1067_v42 }
 0x208   : > { %v2134_v9 = vsel %vm2127_vm0, %v2130_v22, %v2133_v31  ;;  %v1072_v12 = vand.u32 2147483647, %v1071_v23  ;;  %v1322_v28 = vshrl.u32 %v2808_v52, %v1319_v29  ;;  %v3804_v16 = vadd.s32 %v3762_v44, %v3772_v47 }
 0x209   : > { %v2135_v39 = vsel %vm2124_vm13, nan, %v2134_v9  ;;  %v1887_v57 = vshll.u32 %v1886_v8, 30  ;;  %v1325_v14 = vshrl.u32 %v2809_v54, %v1319_v29  ;;  %v1317_v20 = vshrl.u32 %v1316_v50, 5 }
 0x20a   : > { %2254 = vst [vmem:[%s3224_s26 + $0x70] sm:$0xff] %v2135_v39  ;;  %v1075_v45 = vmul.f32 %v1074_v26, %v1072_v12  ;;  %v1321_v55 = vshll.u32 %v2807_v48, %v1318_v19  ;;  %v1328_v2 = vshrl.u32 %v2810_v56, %v1319_v29  ;;  %v1324_v40 = vshll.u32 %v2808_v52, %v1318_v19 }
 0x20b   : > { %v3810_v59 = vsub.s32 %v1884_v41, %v1887_v57  ;;  %v1327_v46 = vshll.u32 %v2809_v54, %v1318_v19  ;;  %v1331_v37 = vshrl.u32 %v2811_v58, %v1319_v29  ;;  %v1330_v61 = vshll.u32 %v2810_v56, %v1318_v19 }
 0x20c   : > { %v1076_v44 = vxor.u32 2147483648, %v1075_v45  ;;  %v1323_v47 = vor.u32 %v1322_v28, %v1321_v55  ;;  %v1334_v24 = vshrl.u32 %v2812_v1, %v1319_v29  ;;  %vm1826_vm3 = vcmp.lt.s32.totalorder %v3656_v63, 0 }
 0x20d   : > { %v1890_v35 = vsub.s32 0, %v3810_v59  ;;  %v1326_v10 = vor.u32 %v1325_v14, %v1324_v40  ;;  %v1329_v51 = vor.u32 %v1328_v2, %v1327_v46  ;;  %v1333_v27 = vshll.u32 %v2811_v58, %v1318_v19 }
 0x20e   : > { %v1077_v5 = vsel %vm994_vm6, %v1076_v44, %v1075_v45  ;;  %v1332_v25 = vor.u32 %v1331_v37, %v1330_v61  ;;  %v1352_v7 = vshll.u32 %v1312_v60, 8  ;;  %v2140_v49 = vshrl.u32 %v2139_v30, 23 }
 0x20f   : > { %v1080_v6 = vsel %vm3767_vm10, %v3584_v15, %v1077_v5  ;;  %v2459_v53 = vmin.u32 %v1890_v35, %v3810_v59  ;;  %v1320_v50 = vshrl.u32 %v2807_v48, %v1319_v29  ;;  %v1335_v17 = vor.u32 %v1334_v24, %v1333_v27 }
 0x210   : > { %2703 = vcosq.f32 %v1080_v6  ;;  %v1910_v11 = vsub.s32 4, %v1886_v8  ;;  %vm1336_vm4 = vcmp.lt.s32.totalorder %v1317_v20, 1  ;;  %vm1339_vm5 = vcmp.lt.s32.totalorder %v1317_v20, 4 }
 0x211   : > { %2705 = vsinq.f32 %v1080_v6  ;;  %v1892_v41 = vclz %v2459_v53  ;;  %v1341_v19 = vsel %vm1339_vm5, %v1329_v51, 2102212464  ;;  %v1344_v4 = vsel %vm1336_vm4, %v1323_v47, %v1326_v10 }
 0x212   : > { %vm1337_vm6 = vcmp.lt.s32.totalorder %v1317_v20, 2  ;;  %vm1338_vm7 = vcmp.lt.s32.totalorder %v1317_v20, 3  ;;  %v1345_v33 = vsel %vm1339_vm5, %v1332_v25, 920167782  ;;  %v1348_v42 = vsel %vm1336_vm4, %v1326_v10, %v1329_v51 }
 0x213   : > { %v2460_v43 = vadd.s32 4294967294, %v1892_v41  ;;  %v1340_v0 = vsel %vm1336_vm4, %v1320_v50, %v1323_v47  ;;  %v1346_v36 = vsel %vm1338_vm7, %v1329_v51, %v1345_v33  ;;  %v1349_v21 = vsel %vm1339_vm5, %v1335_v17, 1326507024 }
 0x214   : > { %v1342_v31 = vsel %vm1338_vm7, %v1326_v10, %v1341_v19  ;;  %v1347_v29 = vsel %vm1337_vm6, %v1344_v4, %v1346_v36  ;;  %v1350_v23 = vsel %vm1338_vm7, %v1332_v25, %v1349_v21  ;;  %v2470_v60 = vadd.s32 4294967169, %v2140_v49 }
 0x215   : > { %vm2461_vm8 = vcmp.lt.s32.totalorder %v2460_v43, 0  ;;  %v1351_v22 = vsel %vm1337_vm6, %v1348_v42, %v1350_v23  ;;  %v3829_v30 = vmul.u32.u64.low %v1352_v7, %v1347_v29  ;;  %v3830_v9 = vmul.u32.u64.high %v1352_v7, %v1347_v29, %v3829_v30 }
 0x216   : > { %v1895_v12 = vsel %vm2461_vm8, 0, %v2460_v43  ;;  %v1911_v26 = vsel %vm1826_vm3, %v1910_v11, %v1886_v8  ;;  %v3835_v28 = vmul.u32.u64.low %v1352_v7, %v1351_v22  ;;  %v3836_v39 = vmul.u32.u64.high %v1352_v7, %v1351_v22, %v3835_v28 }
 0x217   : > { %v1896_v57 = vsub.s32 32, %v1895_v12  ;;  %v1900_v14 = vsub.s32 4294967266, %v1895_v12  ;;  %v1343_v45 = vsel %vm1337_vm6, %v1340_v0, %v1342_v31  ;;  %v2146_v55 = vadd.s32 1, %v2470_v60 }
 0x218   : > { %v1086_v2 = vand.u32 3, %v3794_v18  ;;  %vm3842_vm9 = vcmp.le.f32.partialorder %v1824_v32, 0.7853982  ;;  %v1897_v46 = vshll.u32 %v3810_v59, %v1895_v12  ;;  %v1362_v44 = vadd.s32 1, %v3830_v9 }
 0x219   : > { %v1898_v8 = vshrl.u32 %v3804_v16, %v1896_v57  ;;  %v1901_v37 = vadd.s32 127, %v1900_v14  ;;  %vm2147_vm11 = vcmp.gt.s32.totalorder %v2146_v55, 0  ;;  %v1913_v20 = vsel %vm3842_vm9, 0, %v1911_v26  ;;  %v418_v14 = vpop.f32.mrf.mxu0 }
 0x21a   : > { %v1359_v47 = vmul.u32 %v1352_v7, %v1343_v45  ;;  %vm1361_vm10 = vc.u32 %v3836_v39, %v3829_v30  ;;  %v2148_v18 = vsel %vm2147_vm11, %v2146_v55, 0  ;;  %v2143_v59 = vand.u32 8388607, %v2136_v34 }
 0x21b   : > { %v1899_v32 = vor.u32 %v1898_v8, %v1897_v46  ;;  %v1902_v61 = vshll.u32 %v1901_v37, 23  ;;  %v1363_v24 = vsel %vm1361_vm10, %v1362_v44, %v3830_v9  ;;  %vm1084_vm12 = vweird.f32 %v3584_v15 }
 0x21c   : > { %v1364_v16 = vadd.s32 %v1363_v24, %v1359_v47  ;;  %v2150_v35 = vand.u32 31, %v2148_v18  ;;  %vm1087_vm13 = vcmp.lt.s32.totalorder %v1086_v2, 2  ;;  %vm1088_vm14 = vcmp.eq.s32.totalorder %v1086_v2, 0 }
 0x21d   : > { %v2704_v10 = vpop.eup %2703  ;;  %vm1091_vm15 = vcmp.eq.s32.totalorder %v1086_v2, 2  ;;  %v1903_v51 = vor.u32 4788187, %v1902_v61  ;;  %v1917_v25 = vadd.s32 3, %v1913_v20  ;;  %v1906_v50 = vcvt.s32.f32 %v1899_v32 }
 0x21e   : > { %v2706_v27 = vpop.eup %2705  ;;  %v1092_v5 = vxor.u32 2147483648, %v2704_v10  ;;  %v1365_v7 = vadd.s32 536870912, %v1364_v16  ;;  %v2151_v49 = vsub.s32 32, %v2150_v35  ;;  %v2144_v17 = vor.u32 8388608, %v2143_v59 }
 0x21f   : > { %v1089_v6 = vxor.u32 2147483648, %v2706_v27  ;;  %v1904_v53 = vand.u32 2147483647, %v1903_v51  ;;  %v2153_v19 = vshll.u32 %v2807_v48, %v2150_v35  ;;  %v2149_v31 = vshrl.u32 %v2148_v18, 5 }
 0x220   : > { %v1093_v11 = vsel %vm1091_vm15, %v1092_v5, %v2706_v27  ;;  %v3857_v41 = vshrl.u32 %v1365_v7, 30  ;;  %v2154_v4 = vshrl.u32 %v2808_v52, %v2151_v49  ;;  %v2157_v43 = vshrl.u32 %v2809_v54, %v2151_v49 }
 0x221   : > { %v1090_v33 = vsel %vm1088_vm14, %v2704_v10, %v1089_v6  ;;  %v1907_v42 = vmul.f32 %v1906_v50, %v1904_v53  ;;  %v2160_v0 = vshrl.u32 %v2810_v56, %v2151_v49  ;;  %v2156_v29 = vshll.u32 %v2808_v52, %v2150_v35  ;;  %v450_v50 = vpop.f32.mrf.mxu1 }
 0x222   : > { %v1094_v36 = vsel %vm1087_vm13, %v1090_v33, %v1093_v11  ;;  %v1367_v21 = vshll.u32 %v3857_v41, 30  ;;  %v2155_v22 = vor.u32 %v2154_v4, %v2153_v19  ;;  %v2159_v9 = vshll.u32 %v2809_v54, %v2150_v35 }
 0x223   : > { %v1095_v23 = vsel %vm1084_vm12, nan, %v1094_v36  ;;  %v1908_v60 = vxor.u32 2147483648, %v1907_v42  ;;  %v2158_v26 = vor.u32 %v2157_v43, %v2156_v29  ;;  %v2162_v28 = vshll.u32 %v2810_v56, %v2150_v35 }
 0x224   : > { %2244 = vst [vmem:[%s3224_s26 + $0x20] sm:$0xff] %v1095_v23  ;;  %v3871_v12 = vsub.s32 %v1364_v16, %v1367_v21  ;;  %v2163_v57 = vshrl.u32 %v2811_v58, %v2151_v49  ;;  %v2161_v55 = vor.u32 %v2160_v0, %v2159_v9  ;;  %v2165_v15 = vshll.u32 %v2811_v58, %v2150_v35 }
 0x225   : > { %v1909_v45 = vsel %vm1826_vm3, %v1908_v60, %v1907_v42  ;;  %v2166_v2 = vshrl.u32 %v2812_v1, %v2151_v49  ;;  %v3882_v8 = vand.u32 3, %v1917_v25  ;;  %vm2168_vm0 = vcmp.lt.s32.totalorder %v2149_v31, 1 }
 0x226   : > { %v1912_v46 = vsel %vm3842_vm9, %v3656_v63, %v1909_v45  ;;  %v1370_v37 = vsub.s32 0, %v3871_v12  ;;  %v2164_v44 = vor.u32 %v2163_v57, %v2162_v28  ;;  %v3886_v47 = vadd.f32 %v3716_v38, %v418_v14 }
 0x227   : > { %2707 = vcosq.f32 %v1912_v46  ;;  %v2167_v20 = vor.u32 %v2166_v2, %v2165_v15  ;;  %v2152_v32 = vshrl.u32 %v2807_v48, %v2151_v49  ;;  %vm2171_vm1 = vcmp.lt.s32.totalorder %v2149_v31, 4 }
 0x228   : > { %2709 = vsinq.f32 %v1912_v46  ;;  %v2439_v18 = vmin.u32 %v1370_v37, %v3871_v12  ;;  %v2173_v61 = vsel %vm2171_vm1, %v2161_v55, 2102212464  ;;  %v2176_v40 = vsel %vm2168_vm0, %v2155_v22, %v2158_v26 }
 0x229   : > { %v2177_v24 = vsel %vm2171_vm1, %v2164_v44, 920167782  ;;  %v2184_v59 = vshll.u32 %v2144_v17, 8  ;;  %vm2170_vm2 = vcmp.lt.s32.totalorder %v2149_v31, 3  ;;  %v2172_v35 = vsel %vm2168_vm0, %v2152_v32, %v2155_v22 }
 0x22a   : > { %v1372_v16 = vclz %v2439_v18  ;;  %v2180_v10 = vsel %vm2168_vm0, %v2158_v26, %v2161_v55  ;;  %vm2169_vm3 = vcmp.lt.s32.totalorder %v2149_v31, 2  ;;  %v2174_v51 = vsel %vm2170_vm2, %v2158_v26, %v2173_v61 }
 0x22b   : > { %v2178_v27 = vsel %vm2170_vm2, %v2161_v55, %v2177_v24  ;;  %v2181_v5 = vsel %vm2171_vm1, %v2167_v20, 1326507024  ;;  %v1390_v7 = vsub.s32 4, %v3857_v41  ;;  %v2175_v49 = vsel %vm2169_vm3, %v2172_v35, %v2174_v51 }
 0x22c   : > { %v2440_v25 = vadd.s32 4294967294, %v1372_v16  ;;  %v2179_v6 = vsel %vm2169_vm3, %v2176_v40, %v2178_v27  ;;  %v2182_v53 = vsel %vm2170_vm2, %v2164_v44, %v2181_v5  ;;  %v1099_v42 = vand.u32 2139095040, %v3886_v47 }
 0x22d   : > { %v2183_v11 = vsel %vm2169_vm3, %v2180_v10, %v2182_v53  ;;  %v3891_v19 = vmul.u32.u64.low %v2184_v59, %v2179_v6  ;;  %v3892_v4 = vmul.u32.u64.high %v2184_v59, %v2179_v6, %v3891_v19  ;;  %vm1306_vm5 = vcmp.lt.s32.totalorder %v3719_v13, 0 }
 0x22e   : > { %vm2441_vm4 = vcmp.lt.s32.totalorder %v2440_v25, 0  ;;  %v3895_v17 = vmul.u32.u64.low %v2184_v59, %v2183_v11  ;;  %v3896_v33 = vmul.u32.u64.high %v2184_v59, %v2183_v11, %v3895_v17  ;;  %v1360_v43 = vadd.s32 %v3829_v30, %v3836_v39 }
 0x22f   : > { %v1375_v0 = vsel %vm2441_vm4, 0, %v2440_v25  ;;  %v3903_v36 = vadd.f32 %v3716_v38, %v450_v50  ;;  %v1391_v29 = vsel %vm1306_vm5, %v1390_v7, %v3857_v41  ;;  %v1100_v23 = vshrl.u32 %v1099_v42, 23 }
 0x230   : > { %v1376_v21 = vsub.s32 32, %v1375_v0  ;;  %v1380_v31 = vsub.s32 4294967266, %v1375_v0  ;;  %vm1919_vm6 = vcmp.lt.s32.totalorder %v3882_v8, 2  ;;  %vm3911_vm7 = vcmp.le.f32.partialorder %v1304_v62, 0.7853982 }
 0x231   : > { %v2191_v30 = vmul.u32 %v2184_v59, %v2175_v49  ;;  %v2194_v39 = vadd.s32 1, %v3892_v4  ;;  %v1377_v38 = vshll.u32 %v3871_v12, %v1375_v0  ;;  %vm2193_vm8 = vc.u32 %v3896_v33, %v3891_v19 }
 0x232   : > { %v1378_v22 = vshrl.u32 %v1360_v43, %v1376_v21  ;;  %v1381_v9 = vadd.s32 127, %v1380_v31  ;;  %v1393_v41 = vsel %vm3911_vm7, 0, %v1391_v29  ;;  %v2430_v28 = vadd.s32 4294967169, %v1100_v23 }
 0x233   : > { %v2195_v26 = vsel %vm2193_vm8, %v2194_v39, %v3892_v4  ;;  %v1931_v62 = vand.u32 2139095040, %v3903_v36  ;;  %vm1920_vm9 = vcmp.eq.s32.totalorder %v3882_v8, 0  ;;  %vm1923_vm11 = vcmp.eq.s32.totalorder %v3882_v8, 2 }
 0x234   : > { %v2708_v57 = vpop.eup %2707  ;;  %v1379_v14 = vor.u32 %v1378_v22, %v1377_v38  ;;  %v1382_v45 = vshll.u32 %v1381_v9, 23  ;;  %v2196_v55 = vadd.s32 %v2195_v26, %v2191_v30  ;;  %v1096_v2 = vand.u32 2147483647, %v3886_v47 }
 0x235   : > { %v2710_v12 = vpop.eup %2709  ;;  %v1924_v15 = vxor.u32 2147483648, %v2708_v57  ;;  %v1106_v46 = vadd.s32 1, %v2430_v28  ;;  %v1397_v20 = vadd.s32 3, %v1393_v41  ;;  %v1932_v40 = vshrl.u32 %v1931_v62, 23 }
 0x236   : > { %v1921_v37 = vxor.u32 2147483648, %v2710_v12  ;;  %v1383_v44 = vor.u32 4788187, %v1382_v45  ;;  %v2197_v18 = vadd.s32 536870912, %v2196_v55  ;;  %v1386_v61 = vcvt.s32.f32 %v1379_v14 }
 0x237   : > { %v1925_v32 = vsel %vm1923_vm11, %v1924_v15, %v2710_v12  ;;  %vm1107_vm10 = vcmp.gt.s32.totalorder %v1106_v46, 0  ;;  %vm1916_vm12 = vweird.f32 %v3656_v63  ;;  %v3935_v7 = vand.u32 3, %v1397_v20 }
 0x238   : > { %v1922_v24 = vsel %vm1920_vm9, %v2708_v57, %v1921_v37  ;;  %v1384_v59 = vand.u32 2147483647, %v1383_v44  ;;  %v3928_v16 = vshrl.u32 %v2197_v18, 30  ;;  %v1108_v35 = vsel %vm1107_vm10, %v1106_v46, 0 }
 0x239   : > { %v1926_v10 = vsel %vm1919_vm6, %v1922_v24, %v1925_v32  ;;  %v1110_v51 = vand.u32 31, %v1108_v35  ;;  %v1103_v6 = vand.u32 8388607, %v1096_v2  ;;  %v1109_v11 = vshrl.u32 %v1108_v35, 5 }
 0x23a   : > { %v1927_v27 = vsel %vm1916_vm12, nan, %v1926_v10  ;;  %v1387_v5 = vmul.f32 %v1386_v61, %v1384_v59  ;;  %v2199_v25 = vshll.u32 %v3928_v16, 30  ;;  %v2462_v63 = vadd.s32 4294967169, %v1932_v40 }
 0x23b   : > { %2252 = vst [vmem:[%s3224_s26 + $0x60] sm:$0xff] %v1927_v27  ;;  %v1111_v53 = vsub.s32 32, %v1110_v51  ;;  %v1113_v8 = vshll.u32 %v2807_v48, %v1110_v51  ;;  %v1116_v17 = vshll.u32 %v2808_v52, %v1110_v51  ;;  %v1119_v21 = vshll.u32 %v2809_v54, %v1110_v51 }
 0x23c   : > { %v1388_v50 = vxor.u32 2147483648, %v1387_v5  ;;  %v3939_v49 = vsub.s32 %v2196_v55, %v2199_v25  ;;  %v1122_v30 = vshll.u32 %v2810_v56, %v1110_v51  ;;  %v1125_v26 = vshll.u32 %v2811_v58, %v1110_v51 }
 0x23d   : > { %v1114_v4 = vshrl.u32 %v2808_v52, %v1111_v53  ;;  %v1117_v42 = vshrl.u32 %v2809_v54, %v1111_v53  ;;  %v1120_v31 = vshrl.u32 %v2810_v56, %v1111_v53  ;;  %v1123_v39 = vshrl.u32 %v2811_v58, %v1111_v53 }
 0x23e   : > { %v1389_v43 = vsel %vm1306_vm5, %v1388_v50, %v1387_v5  ;;  %v2202_v0 = vsub.s32 0, %v3939_v49  ;;  %v1126_v28 = vshrl.u32 %v2812_v1, %v1111_v53  ;;  %v2192_v60 = vadd.s32 %v3891_v19, %v3896_v33 }
 0x23f   : > { %v1392_v29 = vsel %vm3911_vm7, %v3719_v13, %v1389_v43  ;;  %v1115_v23 = vor.u32 %v1114_v4, %v1113_v8  ;;  %v1118_v22 = vor.u32 %v1117_v42, %v1116_v17  ;;  %v1121_v9 = vor.u32 %v1120_v31, %v1119_v21 }
 0x240   : > { %2711 = vcosq.f32 %v1392_v29  ;;  %v2471_v38 = vmin.u32 %v2202_v0, %v3939_v49  ;;  %v1124_v41 = vor.u32 %v1123_v39, %v1122_v30  ;;  %v1104_v57 = vor.u32 8388608, %v1103_v6 }
 0x241   : > { %2713 = vsinq.f32 %v1392_v29  ;;  %v1928_v14 = vand.u32 2147483647, %v3903_v36  ;;  %v1112_v45 = vshrl.u32 %v2807_v48, %v1111_v53  ;;  %v1127_v55 = vor.u32 %v1126_v28, %v1125_v26 }
 0x242   : > { %v2204_v62 = vclz %v2471_v38  ;;  %vm1128_vm13 = vcmp.lt.s32.totalorder %v1109_v11, 1  ;;  %v1938_v12 = vadd.s32 1, %v2462_v63  ;;  %vm1130_vm14 = vcmp.lt.s32.totalorder %v1109_v11, 3 }
 0x243   : > { %vm1131_vm15 = vcmp.lt.s32.totalorder %v1109_v11, 4  ;;  %v1136_v46 = vsel %vm1128_vm13, %v1115_v23, %v1118_v22  ;;  %v1140_v20 = vsel %vm1128_vm13, %v1118_v22, %v1121_v9  ;;  %vm2138_vm0 = vcmp.lt.s32.totalorder %v3776_v3, 0 }
 0x244   : > { %v2472_v15 = vadd.s32 4294967294, %v2204_v62  ;;  %v1133_v37 = vsel %vm1131_vm15, %v1121_v9, 2102212464  ;;  %v1137_v44 = vsel %vm1131_vm15, %v1124_v41, 920167782  ;;  %vm1129_vm2 = vcmp.lt.s32.totalorder %v1109_v11, 2 }
 0x245   : > { %v1141_v18 = vsel %vm1131_vm15, %v1127_v55, 1326507024  ;;  %v1138_v19 = vsel %vm1130_vm14, %v1121_v9, %v1137_v44  ;;  %v1144_v24 = vshll.u32 %v1104_v57, 8  ;;  %v1132_v10 = vsel %vm1128_vm13, %v1112_v45, %v1115_v23 }
 0x246   : > { %vm2473_vm1 = vcmp.lt.s32.totalorder %v2472_v15, 0  ;;  %v1142_v33 = vsel %vm1130_vm14, %v1124_v41, %v1141_v18  ;;  %v1139_v61 = vsel %vm1129_vm2, %v1136_v46, %v1138_v19  ;;  %v1134_v51 = vsel %vm1130_vm14, %v1118_v22, %v1133_v37 }
 0x247   : > { %v2207_v32 = vsel %vm2473_vm1, 0, %v2472_v15  ;;  %v1143_v40 = vsel %vm1129_vm2, %v1140_v20, %v1142_v33  ;;  %v3974_v25 = vmul.u32.u64.low %v1144_v24, %v1139_v61  ;;  %v3975_v6 = vmul.u32.u64.high %v1144_v24, %v1139_v61, %v3974_v25 }
 0x248   : > { %v2208_v59 = vsub.s32 32, %v2207_v32  ;;  %v2212_v35 = vsub.s32 4294967266, %v2207_v32  ;;  %v3971_v27 = vmul.u32.u64.low %v1144_v24, %v1143_v40  ;;  %v3972_v5 = vmul.u32.u64.high %v1144_v24, %v1143_v40, %v3971_v27 }
 0x249   : > { %vm1396_vm3 = vweird.f32 %v3719_v13  ;;  %v2209_v53 = vshll.u32 %v3939_v49, %v2207_v32  ;;  %vm1939_vm4 = vcmp.gt.s32.totalorder %v1938_v12, 0  ;;  %v2222_v8 = vsub.s32 4, %v3928_v16 }
 0x24a   : > { %v2210_v50 = vshrl.u32 %v2192_v60, %v2208_v59  ;;  %v2213_v63 = vadd.s32 127, %v2212_v35  ;;  %v1135_v4 = vsel %vm1129_vm2, %v1132_v10, %v1134_v51  ;;  %v1935_v17 = vand.u32 8388607, %v1928_v14 }
 0x24b   : > { %v1940_v42 = vsel %vm1939_vm4, %v1938_v12, 0  ;;  %vm1399_vm5 = vcmp.lt.s32.totalorder %v3935_v7, 2  ;;  %vm1400_vm6 = vcmp.eq.s32.totalorder %v3935_v7, 0  ;;  %vm1403_vm7 = vcmp.eq.s32.totalorder %v3935_v7, 2 }
 0x24c   : > { %v2211_v43 = vor.u32 %v2210_v50, %v2209_v53  ;;  %v2214_v0 = vshll.u32 %v2213_v63, 23  ;;  %v1942_v21 = vand.u32 31, %v1940_v42  ;;  %vm1153_vm8 = vc.u32 %v3972_v5, %v3974_v25 }
 0x24d   : > { %v2712_v31 = vpop.eup %2711  ;;  %v1154_v49 = vadd.s32 1, %v3975_v6  ;;  %vm3992_vm9 = vcmp.le.f32.partialorder %v2136_v34, 0.7853982  ;;  %v1151_v39 = vmul.u32 %v1144_v24, %v1135_v4  ;;  %v2223_v9 = vsel %vm2138_vm0, %v2222_v8, %v3928_v16 }
 0x24e   : > { %v2714_v11 = vpop.eup %2713  ;;  %v1404_v29 = vxor.u32 2147483648, %v2712_v31  ;;  %v2215_v30 = vor.u32 4788187, %v2214_v0  ;;  %v1943_v38 = vsub.s32 32, %v1942_v21  ;;  %v1936_v26 = vor.u32 8388608, %v1935_v17 }
 0x24f   : > { %v1401_v22 = vxor.u32 2147483648, %v2714_v11  ;;  %v1155_v41 = vsel %vm1153_vm8, %v1154_v49, %v3975_v6  ;;  %v2218_v62 = vcvt.s32.f32 %v2211_v43  ;;  %v1941_v45 = vshrl.u32 %v1940_v42, 5 }
 0x250   : > { %v1405_v28 = vsel %vm1403_vm7, %v1404_v29, %v2714_v11  ;;  %v2216_v60 = vand.u32 2147483647, %v2215_v30  ;;  %v1156_v57 = vadd.s32 %v1155_v41, %v1151_v39  ;;  %v1946_v55 = vshrl.u32 %v2808_v52, %v1943_v38 }
 0x251   : > { %v1402_v34 = vsel %vm1400_vm6, %v2712_v31, %v1401_v22  ;;  %v1949_v12 = vshrl.u32 %v2809_v54, %v1943_v38  ;;  %v1952_v37 = vshrl.u32 %v2810_v56, %v1943_v38  ;;  %v1945_v20 = vshll.u32 %v2807_v48, %v1942_v21 }
 0x252   : > { %v1406_v15 = vsel %vm1399_vm5, %v1402_v34, %v1405_v28  ;;  %v2219_v16 = vmul.f32 %v2218_v62, %v2216_v60  ;;  %v1157_v46 = vadd.s32 536870912, %v1156_v57  ;;  %v1948_v18 = vshll.u32 %v2808_v52, %v1942_v21 }
 0x253   : > { %v1407_v44 = vsel %vm1396_vm3, nan, %v1406_v15  ;;  %v1951_v19 = vshll.u32 %v2809_v54, %v1942_v21  ;;  %v1954_v7 = vshll.u32 %v2810_v56, %v1942_v21  ;;  %v1955_v61 = vshrl.u32 %v2811_v58, %v1943_v38 }
 0x254   : > { %2247 = vst [vmem:[%s3224_s26 + $0x38] sm:$0xff] %v1407_v44  ;;  %v2220_v33 = vxor.u32 2147483648, %v2219_v16  ;;  %v4013_v32 = vshrl.u32 %v1157_v46, 30  ;;  %v1947_v40 = vor.u32 %v1946_v55, %v1945_v20  ;;  %v1950_v24 = vor.u32 %v1949_v12, %v1948_v18 }
 0x255   : > { %v1957_v59 = vshll.u32 %v2811_v58, %v1942_v21  ;;  %v1958_v13 = vshrl.u32 %v2812_v1, %v1943_v38  ;;  %v1953_v54 = vor.u32 %v1952_v37, %v1951_v19  ;;  %v1956_v10 = vor.u32 %v1955_v61, %v1954_v7 }
 0x256   : > { %v2221_v35 = vsel %vm2138_vm0, %v2220_v33, %v2219_v16  ;;  %v1159_v52 = vshll.u32 %v4013_v32, 30  ;;  %v2225_v56 = vsel %vm3992_vm9, 0, %v2223_v9  ;;  %vm1960_vm11 = vcmp.lt.s32.totalorder %v1941_v45, 1 }
 0x257   : > { %v2224_v51 = vsel %vm3992_vm9, %v3776_v3, %v2221_v35  ;;  %v1959_v27 = vor.u32 %v1958_v13, %v1957_v59  ;;  %v1976_v58 = vshll.u32 %v1936_v26, 8  ;;  %v1944_v1 = vshrl.u32 %v2807_v48, %v1943_v38 }
 0x258   : > { %2715 = vcosq.f32 %v2224_v51  ;;  %v1160_v6 = vsub.s32 %v1156_v57, %v1159_v52  ;;  %vm1963_vm10 = vcmp.lt.s32.totalorder %v1941_v45, 4  ;;  %v1968_v53 = vsel %vm1960_vm11, %v1947_v40, %v1950_v24 }
 0x259   : > { %2717 = vsinq.f32 %v2224_v51  ;;  %vm1962_vm12 = vcmp.lt.s32.totalorder %v1941_v45, 3  ;;  %v1965_v63 = vsel %vm1963_vm10, %v1953_v54, 2102212464  ;;  %v1969_v8 = vsel %vm1963_vm10, %v1956_v10, 920167782 }
 0x25a   : > { %v1162_v50 = vsub.s32 0, %v1160_v6  ;;  %vm1961_vm13 = vcmp.lt.s32.totalorder %v1941_v45, 2  ;;  %v1970_v4 = vsel %vm1962_vm12, %v1953_v54, %v1969_v8  ;;  %v1972_v17 = vsel %vm1960_vm11, %v1950_v24, %v1953_v54 }
 0x25b   : > { %v1973_v42 = vsel %vm1963_vm10, %v1959_v27, 1326507024  ;;  %v1964_v0 = vsel %vm1960_vm11, %v1944_v1, %v1947_v40  ;;  %v1971_v21 = vsel %vm1961_vm13, %v1968_v53, %v1970_v4  ;;  %v1966_v49 = vsel %vm1962_vm12, %v1950_v24, %v1965_v63 }
 0x25c   : > { %v2431_v43 = vmin.u32 %v1162_v50, %v1160_v6  ;;  %v1974_v31 = vsel %vm1962_vm12, %v1956_v10, %v1973_v42  ;;  %v4030_v29 = vmul.u32.u64.low %v1976_v58, %v1971_v21  ;;  %v4031_v48 = vmul.u32.u64.high %v1976_v58, %v1971_v21, %v4030_v29 }
 0x25d   : > { %v1975_v11 = vsel %vm1961_vm13, %v1972_v17, %v1974_v31  ;;  %v2229_v30 = vadd.s32 3, %v2225_v56  ;;  %v1967_v9 = vsel %vm1961_vm13, %v1964_v0, %v1966_v49  ;;  %v1152_v62 = vadd.s32 %v3974_v25, %v3972_v5 }
 0x25e   : > { %v1164_v23 = vclz %v2431_v43  ;;  %v4033_v39 = vmul.u32.u64.low %v1976_v58, %v1975_v11  ;;  %v4034_v38 = vmul.u32.u64.high %v1976_v58, %v1975_v11, %v4033_v39  ;;  %v1986_v41 = vadd.s32 1, %v4031_v48 }
 0x25f   : > { %v2230_v26 = vand.u32 3, %v2229_v30  ;;  %v1983_v60 = vmul.u32 %v1976_v58, %v1967_v9  ;;  %vm2228_vm3 = vweird.f32 %v3776_v3  ;;  %vm1098_vm4 = vcmp.lt.s32.totalorder %v3886_v47, 0 }
 0x260   : > { %v2432_v22 = vadd.s32 4294967294, %v1164_v23  ;;  %vm1985_vm15 = vc.u32 %v4034_v38, %v4030_v29  ;;  %v1182_v56 = vsub.s32 4, %v4013_v32  ;;  %vm1097_vm5 = vcmp.le.f32.partialorder %v1096_v2, 0.7853982 }
 0x261   : > { %v1987_v55 = vsel %vm1985_vm15, %v1986_v41, %v4031_v48  ;;  %vm2235_vm0 = vcmp.eq.s32.totalorder %v2230_v26, 2  ;;  %vm2232_vm1 = vcmp.eq.s32.totalorder %v2230_v26, 0  ;;  %vm2231_vm2 = vcmp.lt.s32.totalorder %v2230_v26, 2 }
 0x262   : > { %vm2433_vm14 = vcmp.lt.s32.totalorder %v2432_v22, 0  ;;  %v1988_v15 = vadd.s32 %v1987_v55, %v1983_v60  ;;  %v1183_v1 = vsel %vm1098_vm4, %v1182_v56, %v4013_v32  ;;  %v1984_v8 = vadd.s32 %v4030_v29, %v4034_v38 }
 0x263   : > { %v1167_v28 = vsel %vm2433_vm14, 0, %v2432_v22  ;;  %v1185_v50 = vsel %vm1097_vm5, 0, %v1183_v1  ;;  %vm1188_vm11 = vweird.f32 %v3886_v47  ;;  %vm1930_vm10 = vcmp.lt.s32.totalorder %v3903_v36, 0 }
 0x264   : > { %v1168_v57 = vsub.s32 32, %v1167_v28  ;;  %v1172_v34 = vsub.s32 4294967266, %v1167_v28  ;;  %v1169_v46 = vshll.u32 %v1160_v6, %v1167_v28  ;;  %v1989_v18 = vadd.s32 536870912, %v1988_v15 }
 0x265   : > { %v2716_v12 = vpop.eup %2715  ;;  %v1189_v42 = vadd.s32 3, %v1185_v50  ;;  %vm1929_vm12 = vcmp.le.f32.partialorder %v1928_v14, 0.7853982 }
 0x266   : > { %v2718_v16 = vpop.eup %2717  ;;  %v2236_v45 = vxor.u32 2147483648, %v2716_v12  ;;  %v1170_v37 = vshrl.u32 %v1152_v62, %v1168_v57  ;;  %v1173_v44 = vadd.s32 127, %v1172_v34  ;;  %v1990_v25 = vshrl.u32 %v1989_v18, 30 }
 0x267   : > { %v2233_v20 = vxor.u32 2147483648, %v2718_v16  ;;  %v1190_v49 = vand.u32 3, %v1189_v42 }
 0x268   : > { %v2237_v19 = vsel %vm2235_vm0, %v2236_v45, %v2718_v16  ;;  %v1171_v33 = vor.u32 %v1170_v37, %v1169_v46  ;;  %v1174_v7 = vshll.u32 %v1173_v44, 23  ;;  %v1991_v59 = vshll.u32 %v1990_v25, 30 }
 0x269   : > { %v2234_v5 = vsel %vm2232_vm1, %v2716_v12, %v2233_v20  ;;  %vm1195_vm7 = vcmp.eq.s32.totalorder %v1190_v49, 2  ;;  %vm1192_vm8 = vcmp.eq.s32.totalorder %v1190_v49, 0  ;;  %vm1191_vm9 = vcmp.lt.s32.totalorder %v1190_v49, 2 }
 0x26a   : > { %v2238_v61 = vsel %vm2231_vm2, %v2234_v5, %v2237_v19  ;;  %v1175_v40 = vor.u32 4788187, %v1174_v7  ;;  %v1178_v35 = vcvt.s32.f32 %v1171_v33  ;;  %v1992_v52 = vsub.s32 %v1988_v15, %v1991_v59 }
 0x26b   : > { %v2239_v24 = vsel %vm2228_vm3, nan, %v2238_v61  ;;  %v2014_v28 = vsub.s32 4, %v1990_v25  ;;  %vm2020_vm0 = vweird.f32 %v3903_v36 }
 0x26c   : > { %2255 = vst [vmem:[%s3224_s26 + $0x78] sm:$0xff] %v2239_v24  ;;  %v1176_v13 = vand.u32 2147483647, %v1175_v40  ;;  %v1994_v10 = vsub.s32 0, %v1992_v52 }
 0x26d   : > { %v2015_v34 = vsel %vm1930_vm10, %v2014_v28, %v1990_v25 }
 0x26e   : > { %v1179_v54 = vmul.f32 %v1178_v35, %v1176_v13  ;;  %v2463_v27 = vmin.u32 %v1994_v10, %v1992_v52  ;;  %v2017_v55 = vsel %vm1929_vm12, 0, %v2015_v34 }
 0x26f   : > { %v2021_v12 = vadd.s32 3, %v2017_v55 }
 0x270   : > { %v1180_v51 = vxor.u32 2147483648, %v1179_v54  ;;  %v1996_v58 = vclz %v2463_v27 }
 0x272   : > { %v1181_v3 = vsel %vm1098_vm4, %v1180_v51, %v1179_v54  ;;  %v2464_v53 = vadd.s32 4294967294, %v1996_v58 }
 0x273   : > { %v1184_v6 = vsel %vm1097_vm5, %v3886_v47, %v1181_v3  ;;  %v2022_v47 = vand.u32 3, %v2021_v12 }
 0x274   : > { %2719 = vcosq.f32 %v1184_v6  ;;  %vm2465_vm6 = vcmp.lt.s32.totalorder %v2464_v53, 0 }
 0x275   : > { %2721 = vsinq.f32 %v1184_v6  ;;  %v1999_v63 = vsel %vm2465_vm6, 0, %v2464_v53  ;;  %vm2027_vm13 = vcmp.eq.s32.totalorder %v2022_v47, 2  ;;  %vm2024_vm14 = vcmp.eq.s32.totalorder %v2022_v47, 0 }
 0x276   : > { %v2000_v4 = vsub.s32 32, %v1999_v63  ;;  %v2004_v17 = vsub.s32 4294967266, %v1999_v63  ;;  %v2001_v43 = vshll.u32 %v1992_v52, %v1999_v63  ;;  %vm2023_vm15 = vcmp.lt.s32.totalorder %v2022_v47, 2 }
 0x278   : > { %v2002_v0 = vshrl.u32 %v1984_v8, %v2000_v4  ;;  %v2005_v2 = vadd.s32 127, %v2004_v17 }
 0x27a   : > { %v2003_v21 = vor.u32 %v2002_v0, %v2001_v43  ;;  %v2006_v31 = vshll.u32 %v2005_v2, 23 }
 0x27c   : > { %v2007_v11 = vor.u32 4788187, %v2006_v31  ;;  %v2010_v32 = vcvt.s32.f32 %v2003_v21 }
 0x27e   : > { %v2008_v23 = vand.u32 2147483647, %v2007_v11 }
 0x280   : > { %v2011_v9 = vmul.f32 %v2010_v32, %v2008_v23 }
 0x281   : > { %v2720_v48 = vpop.eup %2719 }
 0x282   : > { %v2722_v30 = vpop.eup %2721  ;;  %v1196_v39 = vxor.u32 2147483648, %v2720_v48  ;;  %v2012_v41 = vxor.u32 2147483648, %v2011_v9 }
 0x283   : > { %v1193_v22 = vxor.u32 2147483648, %v2722_v30 }
 0x284   : > { %v1197_v29 = vsel %vm1195_vm7, %v1196_v39, %v2722_v30  ;;  %v2013_v62 = vsel %vm1930_vm10, %v2012_v41, %v2011_v9 }
 0x285   : > { %v1194_v38 = vsel %vm1192_vm8, %v2720_v48, %v1193_v22  ;;  %v2016_v57 = vsel %vm1929_vm12, %v3903_v36, %v2013_v62 }
 0x286   : > { %v1198_v26 = vsel %vm1191_vm9, %v1194_v38, %v1197_v29  ;;  %2723 = vcosq.f32 %v2016_v57 }
 0x287   : > { %v1199_v60 = vsel %vm1188_vm11, nan, %v1198_v26  ;;  %2725 = vsinq.f32 %v2016_v57 }
 0x288   : > { %2245 = vst [vmem:[%s3224_s26 + $0x28] sm:$0xff] %v1199_v60 }
 0x293   : > { %v2724_v15 = vpop.eup %2723 }
 0x294   : > { %v2726_v16 = vpop.eup %2725  ;;  %v2028_v45 = vxor.u32 2147483648, %v2724_v15 }
 0x295   : > { %v2025_v46 = vxor.u32 2147483648, %v2726_v16 }
 0x296   : > { %v2029_v14 = vsel %vm2027_vm13, %v2028_v45, %v2726_v16 }
 0x297   : > { %v2026_v37 = vsel %vm2024_vm14, %v2724_v15, %v2025_v46 }
 0x298   : > { %v2030_v44 = vsel %vm2023_vm15, %v2026_v37, %v2029_v14 }
 0x299   : > { %v2031_v20 = vsel %vm2020_vm0, nan, %v2030_v44 }
 0x29a   : > { %2253 = vst [vmem:[%s3224_s26 + $0x68] sm:$0xff] %v2031_v20 }
 0x29b   : > { %2742 = shalt.err (!%p2739_p5)
}
 0x29c   : > { %s2743_s19 = scalar_lea.hbm %s4062_s8, 2048  ;;  %s2747_s26 = scalar_lea.hbm %s4118_s3, 4096 }
 0x29d   : > { %p2744_p6 = scmp.ne.s32.totalorder %s4062_s8, %s2743_s19  ;;  %p2748_p10 = scmp.lt.s32.totalorder %s4062_s8, %s4118_s3 }
 0x29e   : > { %p2749_p11 = scmp.lt.s32.totalorder %s2747_s26, %s2743_s19 }
 0x29f   : > { %p2745_p7 = pnand %p2744_p6, %p2876_p4 }
 0x2a0   : > { %p2750_p12 = por %p2749_p11, %p2748_p10 }
 0x2a1   : > { %p2746_p9 = pneg %p2745_p7 }
 0x2a3   : > { %p2751_p13 = pnand %p2750_p12, %p2746_p9 }
 0x2a5   : > { %2754 = shalt.err (!%p2751_p13)
}
 0x2a6   : > { %s2814_s29 = smov 128   ;;  %s2815_s30 = smov 8  }
 0x2a7   : > { %2588 = dma.vmem_to_hbm [thread:$0]  (%p2876_p4), %s4064_s5, 2048, %s4062_s8, %s4070_s15, %s2814_s29, %s2814_s29, %s2815_s30  }
 0x2a8 PF: > { %p2594_p0 = scmp.ge.s32.totalorder %s2805_s17, 2  ;;  %s2286_s4 = sand.u32 1, %s2785_s12  }
 0x2a9   : > { %s2287_s6 = scalar_lea.sflag [#allocation3], %s2286_s4 }
 0x2aa   : > { %p2591_p1 = pnand %p2594_p0, %p2883_p8 }
 0x2ac   : > { %p2592_p2 = pneg %p2591_p1 }
 0x2ae   : > { %2780 = dma.done.wait (%p2592_p2), %s2287_s6, 2048  }
 0x2af   : > { %2782 = vsyncadd (%p2592_p2), %s2287_s6, 4294965248  ;;  %s16_s17 = sadd.s32 1, %s2805_s17   ;;  %s4149_s12 = smov %s2789_s13 }
 0x2b0   : > { %p13_p3 = scmp.ge.s32.totalorder %s16_s17, 4   ;;  %s4150_s13 = smov %s2793_s14 }
 0x2b1   : > { %s4151_s14 = smov %s2889_s25  ;;  %s4152_s15 = smov %s2801_s16 }
 0x2b2   : > { %s4153_s16 = smov %s4155_s20  ;;  %15 = sbr.rel (!%p13_p3) target bundleno = 4 (0x4), region = 85 }
 0x2b7   :  { %2292 = vsyncpa [#allocation3], 1 }
 0x2b8   :  { %2294 = vsyncpa [#allocation3 + $0x1], 1 }

</bundles_post_ra>
